<compile_context>
chip_gen: v6e
topology: v6e:2x2x1
jax: 0.10.0
libtpu: 0.0.40
codegen_flags: <defaults>
</compile_context>

<pallas_src>
import functools

import jax
import jax.numpy as jnp
from jax.experimental import pallas as pl
from jax.experimental.pallas import tpu as pltpu


VMEM_LIMIT = 32 * 1024 * 1024  # well below v7x's 64 MiB physical per-TC VMEM


# --------------------------- conv1: tiled fused GEMM ------------------------ #
def _gemm_bias_relu_kernel(x_ref, w_ref, b_ref, o_ref):
    acc = jnp.dot(x_ref[...], w_ref[...], preferred_element_type=jnp.float32)
    acc = jnp.maximum(acc + b_ref[...], 0.0)
    o_ref[...] = acc.astype(o_ref.dtype)


def _round_up(v, m):
    return ((v + m - 1) // m) * m


def _pick_tm(M, K, N, out_bytes, tm_max=512, budget=16 * 1024 * 1024):
    """Row-tile choice.  The pipeline double-buffers EVERY block, including the
    'resident' weight/bias (constant index_map), so count them twice.  Cap the
    tile at ~M/2 so the M grid has >= 2 steps and both v7x TCs get work."""
    fixed = 2 * (K * N * 2 + N * 4)                 # bf16 weight + f32 bias, x2 buffers
    per_row = 2 * (K * 2 + N * out_bytes)           # double-buffered x (bf16) + out row
    tm_budget = max(8, (budget - fixed) // max(per_row, 1))
    half_m = _round_up(max(1, (M + 1) // 2), 8)
    tm = max(8, min(tm_max, tm_budget, half_m))
    return (tm // 8) * 8


def gemm_bias_relu(x, w, b, *, out_dtype=jnp.bfloat16, tm_max=512):
    """Fused relu(x @ w + b).  x:(M,K), w:(K,N) bf16, b:(N,) f32."""
    M, K = x.shape
    K2, N = w.shape
    assert K == K2, (K, K2)
    b2 = b.reshape(1, N).astype(jnp.float32)
    tm = _pick_tm(M, K, N, jnp.dtype(out_dtype).itemsize, tm_max=tm_max)

    return pl.pallas_call(
        _gemm_bias_relu_kernel,
        out_shape=jax.ShapeDtypeStruct((M, N), out_dtype),
        grid_spec=pltpu.PrefetchScalarGridSpec(
            num_scalar_prefetch=0,
            grid=(pl.cdiv(M, tm),),
            in_specs=[
                pl.BlockSpec((tm, K), lambda i: (i, 0)),   # streamed rows
                pl.BlockSpec((K, N), lambda i: (0, 0)),    # resident weight
                pl.BlockSpec((1, N), lambda i: (0, 0)),    # resident bias
            ],
            out_specs=pl.BlockSpec((tm, N), lambda i: (i, 0)),
        ),
        compiler_params=pltpu.CompilerParams(
            dimension_semantics=("parallel",),
            vmem_limit_bytes=VMEM_LIMIT,
        ),
    )(x.astype(jnp.bfloat16), w.astype(jnp.bfloat16), b2)


# ------------- fused tail: conv2 + conv3 + head1 + policy/value ------------- #
def _tail_kernel(p2_ref, w2_ref, b2_ref, w3_ref, b3_ref, w1_ref, b1_ref,
                 wp_ref, wv_ref, bh_ref, out_ref, x2_ref, co_ref, *,
                 batch, ow2, oh3, ow3, kh3, kw3, c2_oc, c3_oc, h_half):
    # ---- conv2: one GEMM over all (spatial, batch) patch rows ----
    h2 = jnp.dot(p2_ref[...], w2_ref[...], preferred_element_type=jnp.float32)
    x2_ref[...] = jnp.maximum(h2 + b2_ref[...], 0.0).astype(x2_ref.dtype)

    # ---- conv3 (stride 1): in-kernel im2col.  conv2's output rows are
    # ordered (oy2, ox2, n) so each kernel tap is a contiguous static slice ----
    for oy in range(oh3):
        for ox in range(ow3):
            acc = jnp.zeros((batch, c3_oc), jnp.float32)
            for i in range(kh3):
                for j in range(kw3):
                    p_in = (oy + i) * ow2 + (ox + j)
                    xij = x2_ref[pl.ds(p_in * batch, batch), :]        # (batch, c2_oc)
                    wij = w3_ref[pl.ds((i * kw3 + j) * c2_oc, c2_oc), :]
                    acc = acc + jnp.dot(xij, wij,
                                        preferred_element_type=jnp.float32)
            h3 = jnp.maximum(acc + b3_ref[...], 0.0)
            p_out = oy * ow3 + ox
            co_ref[:, pl.ds(p_out * c3_oc, c3_oc)] = h3.astype(co_ref.dtype)

    # ---- head-1: fused [policy | value] first layers (one GEMM) ----
    hid = jnp.dot(co_ref[...], w1_ref[...], preferred_element_type=jnp.float32)
    hid = jnp.maximum(hid + b1_ref[...], 0.0).astype(jnp.bfloat16)     # (batch, 2*h_half)

    # ---- head-2: two small dots, lane-dense padded (batch, 128) output ----
    pol = jnp.dot(hid[:, :h_half], wp_ref[...], preferred_element_type=jnp.float32)
    val = jnp.dot(hid[:, h_half:], wv_ref[...], preferred_element_type=jnp.float32)
    out_ref[...] = (pol + val + bh_ref[...]).astype(out_ref.dtype)


def _full2(shape):
    return pl.BlockSpec(shape, lambda i: (0, 0))


def fused_tail(patches2, w2, b2, w3, b3, w1, b1, wp, wv, bh, *,
               batch, ow2, oh3, ow3, kh3, kw3):
    m2, _ = patches2.shape
    c2_oc = w2.shape[1]
    c3_oc = w3.shape[1]
    p3 = oh3 * ow3
    h1_out = w1.shape[1]
    nout = wp.shape[1]
    assert w3.shape[0] == kh3 * kw3 * c2_oc
    assert w1.shape[0] == p3 * c3_oc
    assert h1_out % 2 == 0

    kernel = functools.partial(
        _tail_kernel, batch=batch, ow2=ow2, oh3=oh3, ow3=ow3, kh3=kh3,
        kw3=kw3, c2_oc=c2_oc, c3_oc=c3_oc, h_half=h1_out // 2)

    return pl.pallas_call(
        kernel,
        out_shape=jax.ShapeDtypeStruct((batch, nout), jnp.float32),
        grid_spec=pltpu.PrefetchScalarGridSpec(
            num_scalar_prefetch=0,
            grid=(1,),
            in_specs=[
                _full2(patches2.shape),        # conv2 patches (spatial-major)
                _full2(w2.shape), _full2((1, c2_oc)),
                _full2(w3.shape), _full2((1, c3_oc)),
                _full2(w1.shape), _full2((1, h1_out)),
                _full2(wp.shape), _full2(wv.shape), _full2((1, nout)),
            ],
            out_specs=_full2((batch, nout)),
            scratch_shapes=[
                pltpu.VMEM((m2, c2_oc), jnp.bfloat16),        # conv2 output
                pltpu.VMEM((batch, p3 * c3_oc), jnp.bfloat16)  # conv_out (HWC flatten)
            ],
        ),
        compiler_params=pltpu.CompilerParams(
            dimension_semantics=("arbitrary",),
            vmem_limit_bytes=VMEM_LIMIT,
        ),
    )(patches2, w2, b2.reshape(1, -1), w3, b3.reshape(1, -1),
      w1, b1.reshape(1, -1), wp, wv, bh.reshape(1, -1))


# ------------------------------ im2col glue --------------------------------- #
def _im2col_nhwc(x, kh, kw, stride):
    """x: (N, H, W, C) -> (N, OH, OW, KH*KW*C), K ordered (kh, kw, c)."""
    n, h, w, c = x.shape
    oh = (h - kh) // stride + 1
    ow = (w - kw) // stride + 1
    cols = []
    for i in range(kh):
        for j in range(kw):
            cols.append(x[:, i:i + stride * oh:stride, j:j + stride * ow:stride, :])
    return jnp.concatenate(cols, axis=-1), (oh, ow)


# ------------------------------ NetA2C model -------------------------------- #
def _conv_out_hw(h, k, s):
    return (h - k) // s + 1


def init_params(key, input_shape, n_actions):
    """PyTorch-layout parameters (what a checkpoint would provide)."""
    c, h, w = input_shape
    h1, w1 = _conv_out_hw(h, 8, 4), _conv_out_hw(w, 8, 4)
    h2, w2 = _conv_out_hw(h1, 4, 2), _conv_out_hw(w1, 4, 2)
    h3, w3 = _conv_out_hw(h2, 3, 1), _conv_out_hw(w2, 3, 1)
    conv_out_size = 64 * h3 * w3

    keys = jax.random.split(key, 14)

    def uinit(k, shape, fan_in):
        bound = 1.0 / float(fan_in) ** 0.5
        return jax.random.uniform(k, shape, jnp.float32, -bound, bound)

    return {
        "c1_w": uinit(keys[0], (32, c, 8, 8), c * 8 * 8),
        "c1_b": uinit(keys[1], (32,), c * 8 * 8),
        "c2_w": uinit(keys[2], (64, 32, 4, 4), 32 * 4 * 4),
        "c2_b": uinit(keys[3], (64,), 32 * 4 * 4),
        "c3_w": uinit(keys[4], (64, 64, 3, 3), 64 * 3 * 3),
        "c3_b": uinit(keys[5], (64,), 64 * 3 * 3),
        "p1_w": uinit(keys[6], (512, conv_out_size), conv_out_size),
        "p1_b": uinit(keys[7], (512,), conv_out_size),
        "p2_w": uinit(keys[8], (n_actions, 512), 512),
        "p2_b": uinit(keys[9], (n_actions,), 512),
        "v1_w": uinit(keys[10], (512, conv_out_size), conv_out_size),
        "v1_b": uinit(keys[11], (512,), conv_out_size),
        "v2_w": uinit(keys[12], (1, 512), 512),
        "v2_b": uinit(keys[13], (1,), 512),
    }


def prepare_params(tp, input_shape):
    """One-time conversion of PyTorch-layout params to kernel-friendly layout:
    pre-transposed, CHW->HWC re-indexed, heads fused, head-2 zero-padded to a
    128-lane-dense output, bf16 weights / f32 biases."""
    c, h, w = input_shape
    h1, w1 = _conv_out_hw(h, 8, 4), _conv_out_hw(w, 8, 4)
    h2, w2 = _conv_out_hw(h1, 4, 2), _conv_out_hw(w1, 4, 2)
    h3, w3 = _conv_out_hw(h2, 3, 1), _conv_out_hw(w2, 3, 1)

    def conv_w(wt):  # (OC, C, KH, KW) -> (KH*KW*C, OC), matching im2col K order
        oc, ci, kh, kw = wt.shape
        return wt.transpose(2, 3, 1, 0).reshape(kh * kw * ci, oc).astype(jnp.bfloat16)

    def head1_w(wt):  # (512, conv_out[C,H,W]) -> (conv_out[H,W,C], 512)
        return (wt.reshape(512, 64, h3, w3)
                  .transpose(0, 2, 3, 1)
                  .reshape(512, -1).T)

    n_actions = tp["p2_w"].shape[0]
    assert n_actions + 1 <= 128, "head output padding assumes n_actions < 128"
    head_pad = 128

    h1_w = jnp.concatenate([head1_w(tp["p1_w"]), head1_w(tp["v1_w"])],
                           axis=1).astype(jnp.bfloat16)            # (conv_out, 1024)
    h1_b = jnp.concatenate([tp["p1_b"], tp["v1_b"]]).astype(jnp.float32)

    hp2 = jnp.zeros((512, head_pad), jnp.float32).at[:, :n_actions].set(tp["p2_w"].T)
    hv2 = jnp.zeros((512, head_pad), jnp.float32).at[:, n_actions].set(tp["v2_w"][0])
    h2_b = (jnp.zeros((head_pad,), jnp.float32)
            .at[:n_actions].set(tp["p2_b"]).at[n_actions].set(tp["v2_b"][0]))

    return {
        "c1_w": conv_w(tp["c1_w"]), "c1_b": tp["c1_b"].astype(jnp.float32),
        "c2_w": conv_w(tp["c2_w"]), "c2_b": tp["c2_b"].astype(jnp.float32),
        "c3_w": conv_w(tp["c3_w"]), "c3_b": tp["c3_b"].astype(jnp.float32),
        "h1_w": h1_w, "h1_b": h1_b,
        "hp2_w": hp2.astype(jnp.bfloat16), "hv2_w": hv2.astype(jnp.bfloat16),
        "h2_b": h2_b,
    }


def net_a2c_forward(params, x, *, n_actions):
    """x: (N, C, H, W) like PyTorch. Returns (policy (N, n_actions), value (N, 1))."""
    n = x.shape[0]
    # NCHW -> NHWC once, straight to bf16 (no f32 round trip).
    h = jnp.transpose(x, (0, 2, 3, 1)).astype(jnp.bfloat16)

    # conv1 as a tiled Pallas GEMM (wrapper-side patch gather on the raw input).
    p1, (oh1, ow1) = _im2col_nhwc(h, 8, 8, 4)
    p1 = p1.reshape(n * oh1 * ow1, -1)
    c1 = gemm_bias_relu(p1, params["c1_w"], params["c1_b"], out_dtype=jnp.bfloat16)
    c1 = c1.reshape(n, oh1, ow1, -1)

    # conv2 patches ordered (oy2, ox2, n) so the fused kernel can slice the
    # conv2 output per spatial position with contiguous static slices.
    p2, (oh2, ow2) = _im2col_nhwc(c1, 4, 4, 2)
    k2 = p2.shape[-1]
    p2 = jnp.transpose(p2, (1, 2, 0, 3)).reshape(oh2 * ow2 * n, k2)

    oh3, ow3 = _conv_out_hw(oh2, 3, 1), _conv_out_hw(ow2, 3, 1)
    out = fused_tail(
        p2, params["c2_w"], params["c2_b"], params["c3_w"], params["c3_b"],
        params["h1_w"], params["h1_b"], params["hp2_w"], params["hv2_w"],
        params["h2_b"], batch=n, ow2=ow2, oh3=oh3, ow3=ow3, kh3=3, kw3=3)

    policy = out[:, :n_actions]
    value = out[:, n_actions:n_actions + 1]
    return policy, value


if __name__ == "__main__":
    key = jax.random.PRNGKey(0)
    k_param, k_x = jax.random.split(key)

    # smallest spatial size the conv stack admits: 36 -> 8 -> 3 -> 1
    input_shape = (4, 36, 36)
    n_actions = 6
    batch = 2

    torch_layout_params = init_params(k_param, input_shape, n_actions)
    params = prepare_params(torch_layout_params, input_shape)   # one-time, outside jit
    x = jax.random.normal(k_x, (batch,) + input_shape, jnp.float32)

    fwd = jax.jit(functools.partial(net_a2c_forward, n_actions=n_actions))
    policy, value = fwd(params, x)
    jax.block_until_ready((policy, value))

    assert policy.shape == (batch, n_actions), policy.shape
    assert value.shape == (batch, 1), value.shape
    assert bool(jnp.all(jnp.isfinite(policy))) and bool(jnp.all(jnp.isfinite(value)))
    print("KERNEL_OK")
</pallas_src>

<mosaic_0001>
module attributes {stable_mosaic.version = 11 : i64} {
  func.func @_gemm_bias_relu_kernel(%arg0: i32, %arg1: memref<64x256xbf16, #tpu.memory_space<vmem>>, %arg2: memref<256x32xbf16, #tpu.memory_space<vmem>>, %arg3: memref<1x32xf32, #tpu.memory_space<vmem>>, %arg4: memref<64x32xbf16, #tpu.memory_space<vmem>>) attributes {dimension_semantics = [#tpu.dimension_semantics<parallel>], iteration_bounds = array<i64: 2>, scalar_prefetch = 0 : i64, scratch_operands = 0 : i64, tpu.core_type = #tpu.core_type<tc>, window_params = [{transform_indices = @transform_0, window_bounds = array<i64: 64, 256>}, {pipeline_mode = #tpu.pipeline_mode<synchronous>, transform_indices = @transform_1, window_bounds = array<i64: 256, 32>}, {pipeline_mode = #tpu.pipeline_mode<synchronous>, transform_indices = @transform_2, window_bounds = array<i64: 1, 32>}, {transform_indices = @transform_3, window_bounds = array<i64: 64, 32>}]} {
    %c0 = arith.constant 0 : index
    %c0_0 = arith.constant 0 : index
    %0 = vector.load %arg1[%c0, %c0_0] : memref<64x256xbf16, #tpu.memory_space<vmem>>, vector<64x256xbf16>
    %c0_1 = arith.constant 0 : index
    %c0_2 = arith.constant 0 : index
    %1 = vector.load %arg2[%c0_1, %c0_2] : memref<256x32xbf16, #tpu.memory_space<vmem>>, vector<256x32xbf16>
    %cst = arith.constant dense<0.000000e+00> : vector<64x32xf32>
    %2 = tpu.matmul %0, %1, %cst {dimension_numbers = #tpu.dot_dimension_numbers<[1], [0], [0], [1], [0, 0, 1, 1], [], []>} : vector<64x256xbf16>, vector<256x32xbf16>, vector<64x32xf32> -> vector<64x32xf32>
    %c0_3 = arith.constant 0 : index
    %c0_4 = arith.constant 0 : index
    %3 = vector.load %arg3[%c0_3, %c0_4] : memref<1x32xf32, #tpu.memory_space<vmem>>, vector<1x32xf32>
    %4 = vector.broadcast %3 : vector<1x32xf32> to vector<64x32xf32>
    %5 = arith.addf %2, %4 : vector<64x32xf32>
    %cst_5 = arith.constant 0.000000e+00 : f32
    %6 = vector.broadcast %cst_5 : f32 to vector<64x32xf32>
    %7 = arith.maximumf %5, %6 : vector<64x32xf32>
    %8 = arith.truncf %7 : vector<64x32xf32> to vector<64x32xbf16>
    %c0_6 = arith.constant 0 : index
    %c0_7 = arith.constant 0 : index
    %9 = vector.load %arg4[%c0_6, %c0_7] : memref<64x32xbf16, #tpu.memory_space<vmem>>, vector<64x32xbf16>
    tpu.vector_store %arg4[%c0_6, %c0_7], %8 {strides = array<i32>} : memref<64x32xbf16, #tpu.memory_space<vmem>>, vector<64x32xbf16>,
    return
  }
  func.func @transform_0(%arg0: i32) -> (i32, i32) {
    %c0_i32 = arith.constant 0 : i32
    %c0_i32_0 = arith.constant 0 : i32
    return %arg0, %c0_i32 : i32, i32
  }
  func.func @transform_1(%arg0: i32) -> (i32, i32) {
    %c0_i32 = arith.constant 0 : i32
    %c0_i32_0 = arith.constant 0 : i32
    %c0_i32_1 = arith.constant 0 : i32
    return %c0_i32, %c0_i32_0 : i32, i32
  }
  func.func @transform_2(%arg0: i32) -> (i32, i32) {
    %c0_i32 = arith.constant 0 : i32
    %c0_i32_0 = arith.constant 0 : i32
    %c0_i32_1 = arith.constant 0 : i32
    return %c0_i32, %c0_i32_0 : i32, i32
  }
  func.func @transform_3(%arg0: i32) -> (i32, i32) {
    %c0_i32 = arith.constant 0 : i32
    %c0_i32_0 = arith.constant 0 : i32
    return %arg0, %c0_i32 : i32, i32
  }
}

module attributes {stable_mosaic.version = 11 : i64} {
  func.func @_tail_kernel(%arg0: i32, %arg1: memref<18x512xbf16, #tpu.memory_space<vmem>>, %arg2: memref<512x64xbf16, #tpu.memory_space<vmem>>, %arg3: memref<1x64xf32, #tpu.memory_space<vmem>>, %arg4: memref<576x64xbf16, #tpu.memory_space<vmem>>, %arg5: memref<1x64xf32, #tpu.memory_space<vmem>>, %arg6: memref<64x1024xbf16, #tpu.memory_space<vmem>>, %arg7: memref<1x1024xf32, #tpu.memory_space<vmem>>, %arg8: memref<512x128xbf16, #tpu.memory_space<vmem>>, %arg9: memref<512x128xbf16, #tpu.memory_space<vmem>>, %arg10: memref<1x128xf32, #tpu.memory_space<vmem>>, %arg11: memref<2x128xf32, #tpu.memory_space<vmem>>, %arg12: memref<18x64xbf16, #tpu.memory_space<vmem>>, %arg13: memref<2x64xbf16, #tpu.memory_space<vmem>>) attributes {dimension_semantics = [#tpu.dimension_semantics<arbitrary>], iteration_bounds = array<i64: 1>, scalar_prefetch = 0 : i64, scratch_operands = 2 : i64, tpu.core_type = #tpu.core_type<tc>, window_params = [{pipeline_mode = #tpu.pipeline_mode<synchronous>, transform_indices = @transform_0, window_bounds = array<i64: 18, 512>}, {pipeline_mode = #tpu.pipeline_mode<synchronous>, transform_indices = @transform_1, window_bounds = array<i64: 512, 64>}, {pipeline_mode = #tpu.pipeline_mode<synchronous>, transform_indices = @transform_2, window_bounds = array<i64: 1, 64>}, {pipeline_mode = #tpu.pipeline_mode<synchronous>, transform_indices = @transform_3, window_bounds = array<i64: 576, 64>}, {pipeline_mode = #tpu.pipeline_mode<synchronous>, transform_indices = @transform_4, window_bounds = array<i64: 1, 64>}, {pipeline_mode = #tpu.pipeline_mode<synchronous>, transform_indices = @transform_5, window_bounds = array<i64: 64, 1024>}, {pipeline_mode = #tpu.pipeline_mode<synchronous>, transform_indices = @transform_6, window_bounds = array<i64: 1, 1024>}, {pipeline_mode = #tpu.pipeline_mode<synchronous>, transform_indices = @transform_7, window_bounds = array<i64: 512, 128>}, {pipeline_mode = #tpu.pipeline_mode<synchronous>, transform_indices = @transform_8, window_bounds = array<i64: 512, 128>}, {pipeline_mode = #tpu.pipeline_mode<synchronous>, transform_indices = @transform_9, window_bounds = array<i64: 1, 128>}, {pipeline_mode = #tpu.pipeline_mode<synchronous>, transform_indices = @transform_10, window_bounds = array<i64: 2, 128>}]} {
    %c0 = arith.constant 0 : index
    %c0_0 = arith.constant 0 : index
    %0 = vector.load %arg1[%c0, %c0_0] : memref<18x512xbf16, #tpu.memory_space<vmem>>, vector<18x512xbf16>
    %c0_1 = arith.constant 0 : index
    %c0_2 = arith.constant 0 : index
    %1 = vector.load %arg2[%c0_1, %c0_2] : memref<512x64xbf16, #tpu.memory_space<vmem>>, vector<512x64xbf16>
    %cst = arith.constant dense<0.000000e+00> : vector<18x64xf32>
    %2 = tpu.matmul %0, %1, %cst {dimension_numbers = #tpu.dot_dimension_numbers<[1], [0], [0], [1], [0, 0, 1, 1], [], []>} : vector<18x512xbf16>, vector<512x64xbf16>, vector<18x64xf32> -> vector<18x64xf32>
    %c0_3 = arith.constant 0 : index
    %c0_4 = arith.constant 0 : index
    %3 = vector.load %arg3[%c0_3, %c0_4] : memref<1x64xf32, #tpu.memory_space<vmem>>, vector<1x64xf32>
    %4 = vector.broadcast %3 : vector<1x64xf32> to vector<18x64xf32>
    %5 = arith.addf %2, %4 : vector<18x64xf32>
    %cst_5 = arith.constant 0.000000e+00 : f32
    %6 = vector.broadcast %cst_5 : f32 to vector<18x64xf32>
    %7 = arith.maximumf %5, %6 : vector<18x64xf32>
    %8 = arith.truncf %7 : vector<18x64xf32> to vector<18x64xbf16>
    %c0_6 = arith.constant 0 : index
    %c0_7 = arith.constant 0 : index
    %9 = vector.load %arg12[%c0_6, %c0_7] : memref<18x64xbf16, #tpu.memory_space<vmem>>, vector<18x64xbf16>
    tpu.vector_store %arg12[%c0_6, %c0_7], %8 {strides = array<i32>} : memref<18x64xbf16, #tpu.memory_space<vmem>>, vector<18x64xbf16>,
    %cst_8 = arith.constant 0.000000e+00 : f32
    %10 = vector.broadcast %cst_8 : f32 to vector<2x64xf32>
    %c0_9 = arith.constant 0 : index
    %c0_10 = arith.constant 0 : index
    %11 = vector.load %arg12[%c0_9, %c0_10] : memref<18x64xbf16, #tpu.memory_space<vmem>>, vector<2x64xbf16>
    %c0_11 = arith.constant 0 : index
    %c0_12 = arith.constant 0 : index
    %12 = vector.load %arg4[%c0_11, %c0_12] : memref<576x64xbf16, #tpu.memory_space<vmem>>, vector<64x64xbf16>
    %cst_13 = arith.constant dense<0.000000e+00> : vector<2x64xf32>
    %13 = tpu.matmul %11, %12, %cst_13 {dimension_numbers = #tpu.dot_dimension_numbers<[1], [0], [0], [1], [0, 0, 1, 1], [], []>} : vector<2x64xbf16>, vector<64x64xbf16>, vector<2x64xf32> -> vector<2x64xf32>
    %14 = arith.addf %10, %13 : vector<2x64xf32>
    %c2 = arith.constant 2 : index
    %c0_14 = arith.constant 0 : index
    %15 = vector.load %arg12[%c2, %c0_14] : memref<18x64xbf16, #tpu.memory_space<vmem>>, vector<2x64xbf16>
    %c64 = arith.constant 64 : index
    %c0_15 = arith.constant 0 : index
    %16 = vector.load %arg4[%c64, %c0_15] : memref<576x64xbf16, #tpu.memory_space<vmem>>, vector<64x64xbf16>
    %cst_16 = arith.constant dense<0.000000e+00> : vector<2x64xf32>
    %17 = tpu.matmul %15, %16, %cst_16 {dimension_numbers = #tpu.dot_dimension_numbers<[1], [0], [0], [1], [0, 0, 1, 1], [], []>} : vector<2x64xbf16>, vector<64x64xbf16>, vector<2x64xf32> -> vector<2x64xf32>
    %18 = arith.addf %14, %17 : vector<2x64xf32>
    %c4 = arith.constant 4 : index
    %c0_17 = arith.constant 0 : index
    %19 = vector.load %arg12[%c4, %c0_17] : memref<18x64xbf16, #tpu.memory_space<vmem>>, vector<2x64xbf16>
    %c128 = arith.constant 128 : index
    %c0_18 = arith.constant 0 : index
    %20 = vector.load %arg4[%c128, %c0_18] : memref<576x64xbf16, #tpu.memory_space<vmem>>, vector<64x64xbf16>
    %cst_19 = arith.constant dense<0.000000e+00> : vector<2x64xf32>
    %21 = tpu.matmul %19, %20, %cst_19 {dimension_numbers = #tpu.dot_dimension_numbers<[1], [0], [0], [1], [0, 0, 1, 1], [], []>} : vector<2x64xbf16>, vector<64x64xbf16>, vector<2x64xf32> -> vector<2x64xf32>
    %22 = arith.addf %18, %21 : vector<2x64xf32>
    %c6 = arith.constant 6 : index
    %c0_20 = arith.constant 0 : index
    %23 = vector.load %arg12[%c6, %c0_20] : memref<18x64xbf16, #tpu.memory_space<vmem>>, vector<2x64xbf16>
    %c192 = arith.constant 192 : index
    %c0_21 = arith.constant 0 : index
    %24 = vector.load %arg4[%c192, %c0_21] : memref<576x64xbf16, #tpu.memory_space<vmem>>, vector<64x64xbf16>
    %cst_22 = arith.constant dense<0.000000e+00> : vector<2x64xf32>
    %25 = tpu.matmul %23, %24, %cst_22 {dimension_numbers = #tpu.dot_dimension_numbers<[1], [0], [0], [1], [0, 0, 1, 1], [], []>} : vector<2x64xbf16>, vector<64x64xbf16>, vector<2x64xf32> -> vector<2x64xf32>
    %26 = arith.addf %22, %25 : vector<2x64xf32>
    %c8 = arith.constant 8 : index
    %c0_23 = arith.constant 0 : index
    %27 = vector.load %arg12[%c8, %c0_23] : memref<18x64xbf16, #tpu.memory_space<vmem>>, vector<2x64xbf16>
    %c256 = arith.constant 256 : index
    %c0_24 = arith.constant 0 : index
    %28 = vector.load %arg4[%c256, %c0_24] : memref<576x64xbf16, #tpu.memory_space<vmem>>, vector<64x64xbf16>
    %cst_25 = arith.constant dense<0.000000e+00> : vector<2x64xf32>
    %29 = tpu.matmul %27, %28, %cst_25 {dimension_numbers = #tpu.dot_dimension_numbers<[1], [0], [0], [1], [0, 0, 1, 1], [], []>} : vector<2x64xbf16>, vector<64x64xbf16>, vector<2x64xf32> -> vector<2x64xf32>
    %30 = arith.addf %26, %29 : vector<2x64xf32>
    %c10 = arith.constant 10 : index
    %c0_26 = arith.constant 0 : index
    %31 = vector.load %arg12[%c10, %c0_26] : memref<18x64xbf16, #tpu.memory_space<vmem>>, vector<2x64xbf16>
    %c320 = arith.constant 320 : index
    %c0_27 = arith.constant 0 : index
    %32 = vector.load %arg4[%c320, %c0_27] : memref<576x64xbf16, #tpu.memory_space<vmem>>, vector<64x64xbf16>
    %cst_28 = arith.constant dense<0.000000e+00> : vector<2x64xf32>
    %33 = tpu.matmul %31, %32, %cst_28 {dimension_numbers = #tpu.dot_dimension_numbers<[1], [0], [0], [1], [0, 0, 1, 1], [], []>} : vector<2x64xbf16>, vector<64x64xbf16>, vector<2x64xf32> -> vector<2x64xf32>
    %34 = arith.addf %30, %33 : vector<2x64xf32>
    %c12 = arith.constant 12 : index
    %c0_29 = arith.constant 0 : index
    %35 = vector.load %arg12[%c12, %c0_29] : memref<18x64xbf16, #tpu.memory_space<vmem>>, vector<2x64xbf16>
    %c384 = arith.constant 384 : index
    %c0_30 = arith.constant 0 : index
    %36 = vector.load %arg4[%c384, %c0_30] : memref<576x64xbf16, #tpu.memory_space<vmem>>, vector<64x64xbf16>
    %cst_31 = arith.constant dense<0.000000e+00> : vector<2x64xf32>
    %37 = tpu.matmul %35, %36, %cst_31 {dimension_numbers = #tpu.dot_dimension_numbers<[1], [0], [0], [1], [0, 0, 1, 1], [], []>} : vector<2x64xbf16>, vector<64x64xbf16>, vector<2x64xf32> -> vector<2x64xf32>
    %38 = arith.addf %34, %37 : vector<2x64xf32>
    %c14 = arith.constant 14 : index
    %c0_32 = arith.constant 0 : index
    %39 = vector.load %arg12[%c14, %c0_32] : memref<18x64xbf16, #tpu.memory_space<vmem>>, vector<2x64xbf16>
    %c448 = arith.constant 448 : index
    %c0_33 = arith.constant 0 : index
    %40 = vector.load %arg4[%c448, %c0_33] : memref<576x64xbf16, #tpu.memory_space<vmem>>, vector<64x64xbf16>
    %cst_34 = arith.constant dense<0.000000e+00> : vector<2x64xf32>
    %41 = tpu.matmul %39, %40, %cst_34 {dimension_numbers = #tpu.dot_dimension_numbers<[1], [0], [0], [1], [0, 0, 1, 1], [], []>} : vector<2x64xbf16>, vector<64x64xbf16>, vector<2x64xf32> -> vector<2x64xf32>
    %42 = arith.addf %38, %41 : vector<2x64xf32>
    %c16 = arith.constant 16 : index
    %c0_35 = arith.constant 0 : index
    %43 = vector.load %arg12[%c16, %c0_35] : memref<18x64xbf16, #tpu.memory_space<vmem>>, vector<2x64xbf16>
    %c512 = arith.constant 512 : index
    %c0_36 = arith.constant 0 : index
    %44 = vector.load %arg4[%c512, %c0_36] : memref<576x64xbf16, #tpu.memory_space<vmem>>, vector<64x64xbf16>
    %cst_37 = arith.constant dense<0.000000e+00> : vector<2x64xf32>
    %45 = tpu.matmul %43, %44, %cst_37 {dimension_numbers = #tpu.dot_dimension_numbers<[1], [0], [0], [1], [0, 0, 1, 1], [], []>} : vector<2x64xbf16>, vector<64x64xbf16>, vector<2x64xf32> -> vector<2x64xf32>
    %46 = arith.addf %42, %45 : vector<2x64xf32>
    %c0_38 = arith.constant 0 : index
    %c0_39 = arith.constant 0 : index
    %47 = vector.load %arg5[%c0_38, %c0_39] : memref<1x64xf32, #tpu.memory_space<vmem>>, vector<1x64xf32>
    %48 = vector.broadcast %47 : vector<1x64xf32> to vector<2x64xf32>
    %49 = arith.addf %46, %48 : vector<2x64xf32>
    %cst_40 = arith.constant 0.000000e+00 : f32
    %50 = vector.broadcast %cst_40 : f32 to vector<2x64xf32>
    %51 = arith.maximumf %49, %50 : vector<2x64xf32>
    %52 = arith.truncf %51 : vector<2x64xf32> to vector<2x64xbf16>
    %c0_41 = arith.constant 0 : index
    %c0_42 = arith.constant 0 : index
    %53 = vector.load %arg13[%c0_41, %c0_42] : memref<2x64xbf16, #tpu.memory_space<vmem>>, vector<2x64xbf16>
    tpu.vector_store %arg13[%c0_41, %c0_42], %52 {strides = array<i32>} : memref<2x64xbf16, #tpu.memory_space<vmem>>, vector<2x64xbf16>,
    %c0_43 = arith.constant 0 : index
    %c0_44 = arith.constant 0 : index
    %54 = vector.load %arg13[%c0_43, %c0_44] : memref<2x64xbf16, #tpu.memory_space<vmem>>, vector<2x64xbf16>
    %c0_45 = arith.constant 0 : index
    %c0_46 = arith.constant 0 : index
    %55 = vector.load %arg6[%c0_45, %c0_46] : memref<64x1024xbf16, #tpu.memory_space<vmem>>, vector<64x1024xbf16>
    %cst_47 = arith.constant dense<0.000000e+00> : vector<2x1024xf32>
    %56 = tpu.matmul %54, %55, %cst_47 {dimension_numbers = #tpu.dot_dimension_numbers<[1], [0], [0], [1], [0, 0, 1, 1], [], []>} : vector<2x64xbf16>, vector<64x1024xbf16>, vector<2x1024xf32> -> vector<2x1024xf32>
    %c0_48 = arith.constant 0 : index
    %c0_49 = arith.constant 0 : index
    %57 = vector.load %arg7[%c0_48, %c0_49] : memref<1x1024xf32, #tpu.memory_space<vmem>>, vector<1x1024xf32>
    %58 = vector.broadcast %57 : vector<1x1024xf32> to vector<2x1024xf32>
    %59 = arith.addf %56, %58 : vector<2x1024xf32>
    %cst_50 = arith.constant 0.000000e+00 : f32
    %60 = vector.broadcast %cst_50 : f32 to vector<2x1024xf32>
    %61 = arith.maximumf %59, %60 : vector<2x1024xf32>
    %62 = arith.truncf %61 : vector<2x1024xf32> to vector<2x1024xbf16>
    %63 = vector.extract_strided_slice %62 {offsets = [0, 0], sizes = [2, 512], strides = [1, 1]} : vector<2x1024xbf16> to vector<2x512xbf16>
    %c0_51 = arith.constant 0 : index
    %c0_52 = arith.constant 0 : index
    %64 = vector.load %arg8[%c0_51, %c0_52] : memref<512x128xbf16, #tpu.memory_space<vmem>>, vector<512x128xbf16>
    %cst_53 = arith.constant dense<0.000000e+00> : vector<2x128xf32>
    %65 = tpu.matmul %63, %64, %cst_53 {dimension_numbers = #tpu.dot_dimension_numbers<[1], [0], [0], [1], [0, 0, 1, 1], [], []>} : vector<2x512xbf16>, vector<512x128xbf16>, vector<2x128xf32> -> vector<2x128xf32>
    %66 = vector.extract_strided_slice %62 {offsets = [0, 512], sizes = [2, 512], strides = [1, 1]} : vector<2x1024xbf16> to vector<2x512xbf16>
    %c0_54 = arith.constant 0 : index
    %c0_55 = arith.constant 0 : index
    %67 = vector.load %arg9[%c0_54, %c0_55] : memref<512x128xbf16, #tpu.memory_space<vmem>>, vector<512x128xbf16>
    %cst_56 = arith.constant dense<0.000000e+00> : vector<2x128xf32>
    %68 = tpu.matmul %66, %67, %cst_56 {dimension_numbers = #tpu.dot_dimension_numbers<[1], [0], [0], [1], [0, 0, 1, 1], [], []>} : vector<2x512xbf16>, vector<512x128xbf16>, vector<2x128xf32> -> vector<2x128xf32>
    %69 = arith.addf %65, %68 : vector<2x128xf32>
    %c0_57 = arith.constant 0 : index
    %c0_58 = arith.constant 0 : index
    %70 = vector.load %arg10[%c0_57, %c0_58] : memref<1x128xf32, #tpu.memory_space<vmem>>, vector<1x128xf32>
    %71 = vector.broadcast %70 : vector<1x128xf32> to vector<2x128xf32>
    %72 = arith.addf %69, %71 : vector<2x128xf32>
    %c0_59 = arith.constant 0 : index
    %c0_60 = arith.constant 0 : index
    %73 = vector.load %arg11[%c0_59, %c0_60] : memref<2x128xf32, #tpu.memory_space<vmem>>, vector<2x128xf32>
    tpu.vector_store %arg11[%c0_59, %c0_60], %72 {strides = array<i32>} : memref<2x128xf32, #tpu.memory_space<vmem>>, vector<2x128xf32>,
    return
  }
  func.func @transform_0(%arg0: i32) -> (i32, i32) {
    %c0_i32 = arith.constant 0 : i32
    %c0_i32_0 = arith.constant 0 : i32
    %c0_i32_1 = arith.constant 0 : i32
    return %c0_i32, %c0_i32_0 : i32, i32
  }
  func.func @transform_1(%arg0: i32) -> (i32, i32) {
    %c0_i32 = arith.constant 0 : i32
    %c0_i32_0 = arith.constant 0 : i32
    %c0_i32_1 = arith.constant 0 : i32
    return %c0_i32, %c0_i32_0 : i32, i32
  }
  func.func @transform_2(%arg0: i32) -> (i32, i32) {
    %c0_i32 = arith.constant 0 : i32
    %c0_i32_0 = arith.constant 0 : i32
    %c0_i32_1 = arith.constant 0 : i32
    return %c0_i32, %c0_i32_0 : i32, i32
  }
  func.func @transform_3(%arg0: i32) -> (i32, i32) {
    %c0_i32 = arith.constant 0 : i32
    %c0_i32_0 = arith.constant 0 : i32
    %c0_i32_1 = arith.constant 0 : i32
    return %c0_i32, %c0_i32_0 : i32, i32
  }
  func.func @transform_4(%arg0: i32) -> (i32, i32) {
    %c0_i32 = arith.constant 0 : i32
    %c0_i32_0 = arith.constant 0 : i32
    %c0_i32_1 = arith.constant 0 : i32
    return %c0_i32, %c0_i32_0 : i32, i32
  }
  func.func @transform_5(%arg0: i32) -> (i32, i32) {
    %c0_i32 = arith.constant 0 : i32
    %c0_i32_0 = arith.constant 0 : i32
    %c0_i32_1 = arith.constant 0 : i32
    return %c0_i32, %c0_i32_0 : i32, i32
  }
  func.func @transform_6(%arg0: i32) -> (i32, i32) {
    %c0_i32 = arith.constant 0 : i32
    %c0_i32_0 = arith.constant 0 : i32
    %c0_i32_1 = arith.constant 0 : i32
    return %c0_i32, %c0_i32_0 : i32, i32
  }
  func.func @transform_7(%arg0: i32) -> (i32, i32) {
    %c0_i32 = arith.constant 0 : i32
    %c0_i32_0 = arith.constant 0 : i32
    %c0_i32_1 = arith.constant 0 : i32
    return %c0_i32, %c0_i32_0 : i32, i32
  }
  func.func @transform_8(%arg0: i32) -> (i32, i32) {
    %c0_i32 = arith.constant 0 : i32
    %c0_i32_0 = arith.constant 0 : i32
    %c0_i32_1 = arith.constant 0 : i32
    return %c0_i32, %c0_i32_0 : i32, i32
  }
  func.func @transform_9(%arg0: i32) -> (i32, i32) {
    %c0_i32 = arith.constant 0 : i32
    %c0_i32_0 = arith.constant 0 : i32
    %c0_i32_1 = arith.constant 0 : i32
    return %c0_i32, %c0_i32_0 : i32, i32
  }
  func.func @transform_10(%arg0: i32) -> (i32, i32) {
    %c0_i32 = arith.constant 0 : i32
    %c0_i32_0 = arith.constant 0 : i32
    %c0_i32_1 = arith.constant 0 : i32
    return %c0_i32, %c0_i32_0 : i32, i32
  }
}

</mosaic_0001>

<bundles_post_ra>
// kernel: net_a2c_forward.2
= control target key start
LH: loop header
LB: loop body
LE: loop exit
PB: predicated region body
PF: predicated region fallthrough
CT: control target
= control target key end

     0   :  { %s705_s12 = smov 0   ;;  %s805_s0 = inlined_call_operand.vmem [shape: bf16[128,256], index: 0, kind: input, shape index: {}]   ;;  %s806_s1 = inlined_call_operand.vmem [shape: bf16[256,32], index: 1, kind: input, shape index: {}]   ;;  %s807_s2 = inlined_call_operand.vmem [shape: f32[1,32], index: 2, kind: input, shape index: {}]   ;;  %s808_s3 = inlined_call_operand.vmem [shape: bf16[128,32], index: 3, kind: output, shape index: {}]  }
   0x1 LB: > { %s531_s13 = sadd.s32 4294967295, %s683_s12   ;;  %p535_p0 = scmp.ge.s32.totalorder %s683_s12, 1  ;;  %s683_s12 = sphi %s705_s12, %s13_s12  }
   0x2   : > { %p139_p1 = scmp.lt.s32.totalorder %s683_s12, 3 }
   0x4   : > { %p140_p2 = pnand %p535_p0, %p139_p1 }
   0x5   : > { %s536_s16 = sshll.u32 (!%p140_p2), %s531_s13, 3 }
   0x6   : > { %143 = sbr.rel (%p140_p2) target bundleno = 260 (0x104), region = 32  ;;  %p165_p3 = scmp.lt.s32.totalorder (!%p140_p2), %s536_s16, 15 }
   0xb   : > { %v649_v0 = vld [vmem:[%s806_s1 + $0x78] sm:$0xff]   ;;  %v651_v2 = vld [vmem:[%s806_s1 + $0x70] sm:$0xff]   ;;  %v653_v4 = vld [vmem:[%s806_s1 + $0x68] sm:$0xff]   ;;  %s810_s16 = smov (!%p165_p3, %s536_s16), 15  ;;  %vm466_vm0 = vcmask 257024  }
   0xc   : > { %v650_v1 = vld [vmem:[%s806_s1 + $0x38] sm:$0xff]   ;;  %585 = vmatprep.subr.bf16.mxu0 %v649_v0  ;;  %625 = vmatprep.subr.bf16.mxu1 %v649_v0  ;;  %v652_v3 = vld [vmem:[%s806_s1 + $0x30] sm:$0xff]   ;;  %v654_v5 = vld [vmem:[%s806_s1 + $0x28] sm:$0xff]   ;;  %s576_s4 = sshll.u32 %s810_s16, 3  ;;  %s540_s28 = sshll.u32 %s810_s16, 2 }
   0xd   : > { %586 = vmatpush3.bf16.msra.mxu0 %v650_v1  ;;  %633 = vmatpush3.bf16.msra.mxu1 %v650_v1  ;;  %v655_v6 = vld [vmem:[%s806_s1 + $0x60] sm:$0xff]   ;;  %v657_v8 = vld [vmem:[%s806_s1 + $0x58] sm:$0xff]   ;;  %s746_s9 = scalar_lea.vmem %s805_s0, %s576_s4  ;;  %v659_v10 = vld [vmem:[%s806_s1 + $0x50] sm:$0xff]   ;;  %s784_s4 = scalar_lea.vmem %s808_s3, %s540_s28 }
   0xe   : > { %587 = vmatprep.subr.bf16.mxu0 %v651_v2  ;;  %626 = vmatprep.subr.bf16.mxu1 %v651_v2  ;;  %v656_v7 = vld [vmem:[%s806_s1 + $0x20] sm:$0xff]   ;;  %v658_v9 = vld [vmem:[%s806_s1 + $0x18] sm:$0xff]   ;;  %v660_v13 = vld [vmem:[%s806_s1 + $0x10] sm:$0xff]  }
   0xf   : > { %v667_v11 = vld [vmem:[%s746_s9 + $0x4] ss:$8 sps:$4 sm:$0xff]   ;;  %v665_v18 = vld [vmem:[%s746_s9] ss:$8 sps:$4 sm:$0xff]   ;;  %v671_v20 = vld [vmem:[%s746_s9 + $0x14] ss:$8 sps:$4 sm:$0xff]  }
  0x10   : > { %v670_v12 = vld [vmem:[%s746_s9 + $0x24] ss:$8 sps:$4 sm:$0xff]   ;;  %393 = vmatprep.mubr.bf16.mxu0 %v667_v11  ;;  %v668_v19 = vld [vmem:[%s746_s9 + $0x20] ss:$8 sps:$4 sm:$0xff]   ;;  %v673_v21 = vld [vmem:[%s746_s9 + $0x34] ss:$8 sps:$4 sm:$0xff]  }
  0x11   : > { %588 = vmatpush3.bf16.msra.mxu0 %v652_v3  ;;  %634 = vmatpush3.bf16.msra.mxu1 %v652_v3  ;;  %v661_v14 = vld [vmem:[%s806_s1 + $0x48] sm:$0xff]   ;;  %v663_v16 = vld [vmem:[%s806_s1 + $0x40] sm:$0xff]   ;;  %v675_v22 = vld [vmem:[%s746_s9 + $0x10] ss:$8 sps:$4 sm:$0xff]  }
  0x12   : > { %589 = vmatprep.subr.bf16.mxu0 %v653_v4  ;;  %627 = vmatprep.subr.bf16.mxu1 %v653_v4  ;;  %v662_v15 = vld [vmem:[%s806_s1 + $0x8] sm:$0xff]   ;;  %v664_v17 = vld [vmem:[%s806_s1] sm:$0xff]   ;;  %v676_v23 = vld [vmem:[%s746_s9 + $0x30] ss:$8 sps:$4 sm:$0xff]  }
  0x13   : > { %409 = vmatprep.mubr.bf16.mxu1 %v670_v12  ;;  %v541_v26 = vld [vmem:[%s807_s2] ss:$0 sm:$0xff] }
  0x15   : > { %590 = vmatpush3.bf16.msra.mxu0 %v654_v5  ;;  %635 = vmatpush3.bf16.msra.mxu1 %v654_v5 }
  0x16   : > { %591 = vmatprep.subr.bf16.mxu0 %v655_v6  ;;  %628 = vmatprep.subr.bf16.mxu1 %v655_v6 }
  0x19   : > { %592 = vmatpush3.bf16.msra.mxu0 %v656_v7  ;;  %636 = vmatpush3.bf16.msra.mxu1 %v656_v7 }
  0x1a   : > { %593 = vmatprep.subr.bf16.mxu0 %v657_v8  ;;  %629 = vmatprep.subr.bf16.mxu1 %v657_v8 }
  0x1d   : > { %594 = vmatpush3.bf16.msra.mxu0 %v658_v9  ;;  %637 = vmatpush3.bf16.msra.mxu1 %v658_v9 }
  0x1e   : > { %595 = vmatprep.subr.bf16.mxu0 %v659_v10  ;;  %630 = vmatprep.subr.bf16.mxu1 %v659_v10 }
  0x21   : > { %596 = vmatpush3.bf16.msra.mxu0 %v660_v13  ;;  %638 = vmatpush3.bf16.msra.mxu1 %v660_v13 }
  0x22   : > { %597 = vmatprep.subr.bf16.mxu0 %v661_v14  ;;  %631 = vmatprep.subr.bf16.mxu1 %v661_v14 }
  0x25   : > { %598 = vmatpush3.bf16.msra.mxu0 %v662_v15  ;;  %639 = vmatpush3.bf16.msra.mxu1 %v662_v15 }
  0x26   : > { %599 = vmatprep.subr.bf16.mxu0 %v663_v16  ;;  %632 = vmatprep.subr.bf16.mxu1 %v663_v16 }
  0x29   : > { %600 = vmatpush3.bf16.msra.mxu0 %v664_v17  ;;  %640 = vmatpush3.bf16.msra.mxu1 %v664_v17 }
  0x2c   : > { %394 = vmatmul.mubr.bf16.vlgmr.msra.gmra.mxu0 %v665_v18  ;;  %410 = vmatmul.mubr.bf16.vlgmr.msra.gmra.mxu1 %v668_v19 }
  0x2d   : > { %401 = vmatprep.mubr.bf16.mxu0 %v671_v20  ;;  %417 = vmatprep.mubr.bf16.mxu1 %v673_v21 }
  0x34   : > { %402 = vmatmul.mubr.bf16.gmra.mxu0 %v675_v22  ;;  %418 = vmatmul.mubr.bf16.gmra.mxu1 %v676_v23 }
  0xec   : > { %v601_v24 = vpop.f32.mrf.mxu0  ;;  %v613_v25 = vpop.f32.mrf.mxu1 }
  0xee   : > { %v602_v27 = vpop.f32.mrf.mxu0  ;;  %v614_v28 = vpop.f32.mrf.mxu1 }
  0xef   : > { %v603_v29 = vadd.f32 %v602_v27, %v601_v24  ;;  %v615_v30 = vadd.f32 %v614_v28, %v613_v25 }
  0xf0   : > { %v604_v31 = vpop.f32.mrf.mxu0  ;;  %v616_v32 = vpop.f32.mrf.mxu1 }
  0xf1   : > { %v396_v33 = vadd.f32 %v603_v29, %v541_v26  ;;  %v412_v34 = vadd.f32 %v615_v30, %v541_v26 }
  0xf2   : > { %v605_v35 = vpop.f32.mrf.mxu0  ;;  %v617_v36 = vpop.f32.mrf.mxu1 }
  0xf3   : > { %v426_v37 = vmax.f32 %v396_v33, 0.0  ;;  %v430_v38 = vmax.f32 %v412_v34, 0.0  ;;  %v606_v39 = vadd.f32 %v605_v35, %v604_v31  ;;  %v618_v40 = vadd.f32 %v617_v36, %v616_v32 }
  0xf4   : > { %v607_v41 = vpop.f32.mrf.mxu0  ;;  %v619_v42 = vpop.f32.mrf.mxu1 }
  0xf5   : > { %v577_v43 = vpack.c.bf16 %v426_v37, %v426_v37  ;;  %v581_v44 = vpack.c.bf16 %v430_v38, %v430_v38  ;;  %v399_v45 = vadd.f32 %v606_v39, %v541_v26  ;;  %v415_v46 = vadd.f32 %v618_v40, %v541_v26 }
  0xf6   : > { %v608_v47 = vpop.f32.mrf.mxu0  ;;  %v620_v48 = vpop.f32.mrf.mxu1 }
  0xf7   : > { %467 = vst.msk [vmem:[%s784_s4] sm:$0xf] %vm466_vm0, %v577_v43  ;;  %471 = vst.msk [vmem:[%s784_s4 + $0x10] sm:$0xf] %vm466_vm0, %v581_v44  ;;  %v427_v49 = vmax.f32 %v399_v45, 0.0  ;;  %v431_v50 = vmax.f32 %v415_v46, 0.0  ;;  %v609_v51 = vadd.f32 %v608_v47, %v607_v41  ;;  %v621_v52 = vadd.f32 %v620_v48, %v619_v42 }
  0xf8   : > { %v610_v53 = vpop.f32.mrf.mxu0  ;;  %v622_v54 = vpop.f32.mrf.mxu1 }
  0xf9   : > { %v578_v55 = vpack.c.bf16 %v427_v49, %v427_v49  ;;  %v582_v56 = vpack.c.bf16 %v431_v50, %v431_v50  ;;  %v404_v57 = vadd.f32 %v609_v51, %v541_v26  ;;  %v420_v58 = vadd.f32 %v621_v52, %v541_v26 }
  0xfa   : > { %v611_v59 = vpop.f32.mrf.mxu0  ;;  %v623_v60 = vpop.f32.mrf.mxu1 }
  0xfb   : > { %468 = vst.msk [vmem:[%s784_s4 + $0x4] sm:$0xf] %vm466_vm0, %v578_v55  ;;  %472 = vst.msk [vmem:[%s784_s4 + $0x14] sm:$0xf] %vm466_vm0, %v582_v56  ;;  %v428_v61 = vmax.f32 %v404_v57, 0.0  ;;  %v432_v62 = vmax.f32 %v420_v58, 0.0  ;;  %v612_v63 = vadd.f32 %v611_v59, %v610_v53  ;;  %v624_v0 = vadd.f32 %v623_v60, %v622_v54 }
  0xfd   : > { %v579_v1 = vpack.c.bf16 %v428_v61, %v428_v61  ;;  %v583_v2 = vpack.c.bf16 %v432_v62, %v432_v62  ;;  %v407_v3 = vadd.f32 %v612_v63, %v541_v26  ;;  %v423_v4 = vadd.f32 %v624_v0, %v541_v26 }
  0xff   : > { %469 = vst.msk [vmem:[%s784_s4 + $0x8] sm:$0xf] %vm466_vm0, %v579_v1  ;;  %473 = vst.msk [vmem:[%s784_s4 + $0x18] sm:$0xf] %vm466_vm0, %v583_v2  ;;  %v429_v5 = vmax.f32 %v407_v3, 0.0  ;;  %v433_v6 = vmax.f32 %v423_v4, 0.0 }
 0x101   : > { %v580_v7 = vpack.c.bf16 %v429_v5, %v429_v5  ;;  %v584_v8 = vpack.c.bf16 %v433_v6, %v433_v6 }
 0x103   : > { %470 = vst.msk [vmem:[%s784_s4 + $0xc] sm:$0xf] %vm466_vm0, %v580_v7  ;;  %474 = vst.msk [vmem:[%s784_s4 + $0x1c] sm:$0xf] %vm466_vm0, %v584_v8 }
 0x104 PF: > { %s13_s12 = sadd.s32 1, %s683_s12  }
 0x105   : > { %p10_p4 = scmp.ge.s32.totalorder %s13_s12, 4  }
 0x107   :  { %12 = sbr.rel (!%p10_p4) target bundleno = 1 (0x1), region = 62 }

// kernel: net_a2c_forward.3
= control target key start
LH: loop header
LB: loop body
LE: loop exit
PB: predicated region body
PF: predicated region fallthrough
CT: control target
= control target key end

     0   :  { %v2934_v43 = vmov 0.0   ;;  %vm2935_vm0 = vmmov 0   ;;  %vm451_vm1 = vcmask 519168   ;;  %vm502_vm2 = vcmask 523264   ;;  %s3640_s1 = inlined_call_operand.vmem [shape: bf16[512,64], index: 1, kind: input, shape index: {}]   ;;  %s3641_s0 = inlined_call_operand.vmem [shape: bf16[18,512], index: 0, kind: input, shape index: {}]   ;;  %s3642_s3 = inlined_call_operand.vmem [shape: bf16[576,64], index: 3, kind: input, shape index: {}]   ;;  %s3643_s2 = inlined_call_operand.vmem [shape: f32[1,64], index: 2, kind: input, shape index: {}]   ;;  %s3644_s5 = inlined_call_operand.vmem [shape: bf16[64,1024], index: 5, kind: input, shape index: {}]   ;;  %s3645_s8 = inlined_call_operand.vmem [shape: bf16[512,128], index: 8, kind: input, shape index: {}]   ;;  %s3646_s4 = inlined_call_operand.vmem [shape: f32[1,64], index: 4, kind: input, shape index: {}]   ;;  %s3647_s7 = inlined_call_operand.vmem [shape: bf16[512,128], index: 7, kind: input, shape index: {}]   ;;  %s3648_s6 = inlined_call_operand.vmem [shape: f32[1,1024], index: 6, kind: input, shape index: {}]   ;;  %s3649_s9 = inlined_call_operand.vmem [shape: f32[1,128], index: 9, kind: input, shape index: {}]   ;;  %s3650_s10 = inlined_call_operand.vmem [shape: f32[2,128], index: 10, kind: output, shape index: {}]  }
   0x1   :  { %v2786_v0 = vld [vmem:[%s3640_s1 + $0x78] sm:$0xff]   ;;  %v2790_v4 = vld [vmem:[%s3640_s1 + $0x70] sm:$0xff]   ;;  %v2794_v8 = vld [vmem:[%s3640_s1 + $0x68] sm:$0xff]   ;;  %vm454_vm3 = vcmask 516096  }
   0x2   :  { %v2787_v1 = vld [vmem:[%s3640_s1 + $0xf8] sm:$0xff]   ;;  %2486 = vmatprep.subr.bf16.mxu0 %v2786_v0  ;;  %v2791_v5 = vld [vmem:[%s3640_s1 + $0xf0] sm:$0xff]   ;;  %v2795_v9 = vld [vmem:[%s3640_s1 + $0xe8] sm:$0xff]  }
   0x3   :  { %v2788_v2 = vld [vmem:[%s3640_s1 + $0x38] sm:$0xff]   ;;  %2514 = vmatprep.subr.bf16.mxu1 %v2787_v1  ;;  %v2792_v6 = vld [vmem:[%s3640_s1 + $0x30] sm:$0xff]   ;;  %v2796_v10 = vld [vmem:[%s3640_s1 + $0x28] sm:$0xff]  }
   0x4   :  { %v2789_v3 = vld [vmem:[%s3640_s1 + $0xb8] sm:$0xff]   ;;  %2487 = vmatpush3.bf16.msra.mxu0 %v2788_v2  ;;  %v2793_v7 = vld [vmem:[%s3640_s1 + $0xb0] sm:$0xff]   ;;  %v2797_v11 = vld [vmem:[%s3640_s1 + $0xa8] sm:$0xff]  }
   0x5   :  { %2515 = vmatpush3.bf16.msra.mxu1 %v2789_v3  ;;  %2488 = vmatprep.subr.bf16.mxu0 %v2790_v4  ;;  %v2798_v12 = vld [vmem:[%s3640_s1 + $0x60] sm:$0xff]   ;;  %v2802_v16 = vld [vmem:[%s3640_s1 + $0x58] sm:$0xff]   ;;  %v2806_v20 = vld [vmem:[%s3640_s1 + $0x50] sm:$0xff]  }
   0x6   :  { %2516 = vmatprep.subr.bf16.mxu1 %v2791_v5  ;;  %v2799_v13 = vld [vmem:[%s3640_s1 + $0xe0] sm:$0xff]   ;;  %v2803_v17 = vld [vmem:[%s3640_s1 + $0xd8] sm:$0xff]   ;;  %v2807_v21 = vld [vmem:[%s3640_s1 + $0xd0] sm:$0xff]  }
   0x7   :  { %v2800_v14 = vld [vmem:[%s3640_s1 + $0x20] sm:$0xff]   ;;  %v2804_v18 = vld [vmem:[%s3640_s1 + $0x18] sm:$0xff]   ;;  %v2808_v22 = vld [vmem:[%s3640_s1 + $0x10] sm:$0xff]  }
   0x8   :  { %2489 = vmatpush3.bf16.msra.mxu0 %v2792_v6  ;;  %v2801_v15 = vld [vmem:[%s3640_s1 + $0xa0] sm:$0xff]   ;;  %v2805_v19 = vld [vmem:[%s3640_s1 + $0x98] sm:$0xff]   ;;  %v2809_v23 = vld [vmem:[%s3640_s1 + $0x90] sm:$0xff]  }
   0x9   :  { %2517 = vmatpush3.bf16.msra.mxu1 %v2793_v7  ;;  %2490 = vmatprep.subr.bf16.mxu0 %v2794_v8  ;;  %v2810_v24 = vld [vmem:[%s3640_s1 + $0x48] sm:$0xff]   ;;  %v2814_v28 = vld [vmem:[%s3640_s1 + $0x40] sm:$0xff]   ;;  %v2828_v42 = vld [vmem:[%s3642_s3 + $0x18] sm:$0xff]  }
   0xa   :  { %2518 = vmatprep.subr.bf16.mxu1 %v2795_v9  ;;  %v2811_v25 = vld [vmem:[%s3640_s1 + $0xc8] sm:$0xff]   ;;  %v2815_v29 = vld [vmem:[%s3640_s1 + $0xc0] sm:$0xff]   ;;  %v2829_v44 = vld [vmem:[%s3642_s3 + $0x38] sm:$0xff]  }
   0xb   :  { %v2812_v26 = vld [vmem:[%s3640_s1 + $0x8] sm:$0xff]   ;;  %v2816_v30 = vld [vmem:[%s3640_s1] sm:$0xff]   ;;  %v2830_v45 = vld [vmem:[%s3642_s3 + $0x10] sm:$0xff]  }
   0xc   :  { %2491 = vmatpush3.bf16.msra.mxu0 %v2796_v10  ;;  %v2813_v27 = vld [vmem:[%s3640_s1 + $0x88] sm:$0xff]   ;;  %v2817_v31 = vld [vmem:[%s3640_s1 + $0x80] sm:$0xff]   ;;  %v2831_v46 = vld [vmem:[%s3642_s3 + $0x30] sm:$0xff]  }
   0xd   :  { %2519 = vmatpush3.bf16.msra.mxu1 %v2797_v11  ;;  %2492 = vmatprep.subr.bf16.mxu0 %v2798_v12  ;;  %v2818_v32 = vld [vmem:[%s3641_s0] ss:$16 sps:$4 sm:$0xff]   ;;  %v2820_v33 = vld [vmem:[%s3641_s0 + $0x4] ss:$16 sps:$4 sm:$0xff]   ;;  %v2821_v34 = vld [vmem:[%s3641_s0 + $0x8] ss:$16 sps:$4 sm:$0xff]  }
   0xe   :  { %2520 = vmatprep.subr.bf16.mxu1 %v2799_v13  ;;  %v2823_v35 = vld [vmem:[%s3641_s0 + $0xc] ss:$16 sps:$4 sm:$0xff]   ;;  %v40_v36 = vld [vmem:[%s3641_s0 + $0x20] sm:$0x11]  ;;  %371 = vmatprep.mubr.bf16.mxu0 %v2820_v33 }
   0xf   :  { %v2292_v37 = vcombine.high %v40_v36, %v40_v36  ;;  %v41_v38 = vld [vmem:[%s3641_s0 + $0x28] sm:$0x11]  ;;  %419 = vmatprep.mubr.bf16.mxu1 %v2823_v35  ;;  %v2291_v40 = vcombine.low %v40_v36, %v40_v36  ;;  %v2834_v49 = vld [vmem:[%s3642_s3] sm:$0xff]  }
  0x10   :  { %2493 = vmatpush3.bf16.msra.mxu0 %v2800_v14  ;;  %v2294_v39 = vcombine.high %v41_v38, %v41_v38  ;;  %v2293_v41 = vcombine.low %v41_v38, %v41_v38  ;;  %v2832_v47 = vld [vmem:[%s3642_s3 + $0x8] sm:$0xff]   ;;  %v2835_v50 = vld [vmem:[%s3642_s3 + $0x20] sm:$0xff]   ;;  %v2849_v38 = vld [vmem:[%s3642_s3 + $0xb0] sm:$0xff]  }
  0x11   :  { %2521 = vmatpush3.bf16.msra.mxu1 %v2801_v15  ;;  %2494 = vmatprep.subr.bf16.mxu0 %v2802_v16  ;;  %v2833_v48 = vld [vmem:[%s3642_s3 + $0x28] sm:$0xff]   ;;  %v2286_v53 = vld [vmem:[%s3643_s2] ss:$0 sm:$0xff] }
  0x12   :  { %2522 = vmatprep.subr.bf16.mxu1 %v2803_v17  ;;  %v2845_v33 = vld [vmem:[%s3642_s3 + $0x40] sm:$0xff]  }
  0x14   :  { %2495 = vmatpush3.bf16.msra.mxu0 %v2804_v18 }
  0x15   :  { %2523 = vmatpush3.bf16.msra.mxu1 %v2805_v19  ;;  %2496 = vmatprep.subr.bf16.mxu0 %v2806_v20 }
  0x16   :  { %2524 = vmatprep.subr.bf16.mxu1 %v2807_v21  ;;  %v2836_v21 = vld [vmem:[%s3642_s3 + $0x78] sm:$0xff]  }
  0x18   :  { %2497 = vmatpush3.bf16.msra.mxu0 %v2808_v22 }
  0x19   :  { %2525 = vmatpush3.bf16.msra.mxu1 %v2809_v23  ;;  %2498 = vmatprep.subr.bf16.mxu0 %v2810_v24 }
  0x1a   :  { %2526 = vmatprep.subr.bf16.mxu1 %v2811_v25  ;;  %v2838_v25 = vld [vmem:[%s3642_s3 + $0x58] sm:$0xff]  }
  0x1c   :  { %2499 = vmatpush3.bf16.msra.mxu0 %v2812_v26  ;;  %v2839_v26 = vld [vmem:[%s3642_s3 + $0x70] sm:$0xff]  }
  0x1d   :  { %2527 = vmatpush3.bf16.msra.mxu1 %v2813_v27  ;;  %2500 = vmatprep.subr.bf16.mxu0 %v2814_v28  ;;  %v2840_v28 = vld [vmem:[%s3642_s3 + $0x50] sm:$0xff]  }
  0x1e   :  { %2528 = vmatprep.subr.bf16.mxu1 %v2815_v29  ;;  %v2841_v29 = vld [vmem:[%s3642_s3 + $0x68] sm:$0xff]  }
  0x20   :  { %2501 = vmatpush3.bf16.msra.mxu0 %v2816_v30  ;;  %v2842_v30 = vld [vmem:[%s3642_s3 + $0x48] sm:$0xff]  }
  0x21   :  { %2529 = vmatpush3.bf16.msra.mxu1 %v2817_v31  ;;  %2675 = vmatprep.subr.bf16.mxu0 %v2934_v43  ;;  %v2843_v31 = vld [vmem:[%s3642_s3 + $0x60] sm:$0xff]  }
  0x22   :  { %2687 = vmatprep.subr.bf16.mxu1 %v2934_v43 }
  0x23   :  { %372 = vmatmul.mubr.bf16.vlgmr.msra.gmra.mxu0 %v2818_v32 }
  0x24   :  { %420 = vmatmul.mubr.bf16.vlgmr.msra.gmra.mxu1 %v2821_v34  ;;  %379 = vmatprep.mubr.bf16.mxu0 %v2292_v37  ;;  %v2846_v34 = vld [vmem:[%s3642_s3 + $0xb8] sm:$0xff]  }
  0x25   :  { %427 = vmatprep.mubr.bf16.mxu1 %v2294_v39  ;;  %2688 = vmatpush3.bf16.msra.mxu1 %v2828_v42  ;;  %v2848_v37 = vld [vmem:[%s3642_s3 + $0x98] sm:$0xff]   ;;  %v2852_v42 = vld [vmem:[%s3642_s3 + $0x88] sm:$0xff]  }
  0x26   :  { %2689 = vmatprep.subr.bf16.mxu1 %v2934_v43  ;;  %2676 = vmatpush3.bf16.msra.mxu0 %v2829_v44  ;;  %v2853_v44 = vld [vmem:[%s3642_s3 + $0xa0] sm:$0xff]  }
  0x27   :  { %2677 = vmatprep.subr.bf16.mxu0 %v2934_v43 }
  0x29   :  { %2690 = vmatpush3.bf16.msra.mxu1 %v2830_v45 }
  0x2a   :  { %2691 = vmatprep.subr.bf16.mxu1 %v2934_v43  ;;  %2678 = vmatpush3.bf16.msra.mxu0 %v2831_v46  ;;  %v2855_v46 = vld [vmem:[%s3642_s3 + $0x80] sm:$0xff]  }
  0x2b   :  { %380 = vmatmul.mubr.bf16.gmra.mxu0 %v2291_v40  ;;  %2679 = vmatprep.subr.bf16.mxu0 %v2934_v43  ;;  %v2850_v40 = vld [vmem:[%s3642_s3 + $0x90] sm:$0xff]  }
  0x2c   :  { %428 = vmatmul.mubr.bf16.gmra.mxu1 %v2293_v41  ;;  %2683 = vmatprep.mubr.msk.bf16.mxu0 %vm2935_vm0, %v2934_v43  ;;  %v2851_v41 = vld [vmem:[%s3642_s3 + $0xa8] sm:$0xff]  }
  0x2d   :  { %2692 = vmatpush3.bf16.msra.mxu1 %v2832_v47  ;;  %2695 = vmatprep.mubr.msk.bf16.mxu1 %vm2935_vm0, %v2934_v43  ;;  %v2856_v47 = vld [vmem:[%s3642_s3 + $0xf8] sm:$0xff]  }
  0x2e   :  { %2693 = vmatprep.subr.bf16.mxu1 %v2934_v43  ;;  %2680 = vmatpush3.bf16.msra.mxu0 %v2833_v48 }
  0x2f   :  { %2681 = vmatprep.subr.bf16.mxu0 %v2934_v43 }
  0x31   :  { %2694 = vmatpush3.bf16.msra.mxu1 %v2834_v49  ;;  %v2857_v49 = vld [vmem:[%s3642_s3 + $0xd8] sm:$0xff]  }
  0x32   :  { %2711 = vmatprep.subr.bf16.mxu1 %v2934_v43  ;;  %2682 = vmatpush3.bf16.msra.mxu0 %v2835_v50  ;;  %v2858_v50 = vld [vmem:[%s3642_s3 + $0xf0] sm:$0xff]  }
  0x33   :  { %2699 = vmatprep.subr.bf16.mxu0 %v2934_v43 }
  0xe3   :  { %v2502_v51 = vpop.f32.mrf.mxu0 }
  0xe4   :  { %v2530_v52 = vpop.f32.mrf.mxu1 }
  0xe5   :  { %v2503_v54 = vpop.f32.mrf.mxu0 }
  0xe6   :  { %v2504_v55 = vadd.f32 %v2503_v54, %v2502_v51  ;;  %v2531_v56 = vpop.f32.mrf.mxu1  ;;  %v2861_v54 = vld [vmem:[%s3642_s3 + $0xc8] sm:$0xff]  }
  0xe7   :  { %v2505_v57 = vpop.f32.mrf.mxu0  ;;  %v2532_v59 = vadd.f32 %v2531_v56, %v2530_v52  ;;  %v2859_v52 = vld [vmem:[%s3642_s3 + $0xd0] sm:$0xff]  }
  0xe8   :  { %v374_v58 = vadd.f32 %v2504_v55, %v2286_v53  ;;  %v2533_v60 = vpop.f32.mrf.mxu1  ;;  %v2862_v55 = vld [vmem:[%s3642_s3 + $0xe0] sm:$0xff]  }
  0xe9   :  { %v2506_v61 = vpop.f32.mrf.mxu0 }
  0xea   :  { %v422_v62 = vadd.f32 %v2532_v59, %v374_v58  ;;  %v2507_v63 = vadd.f32 %v2506_v61, %v2505_v57  ;;  %v2534_v0 = vpop.f32.mrf.mxu1  ;;  %v2864_v57 = vld [vmem:[%s3642_s3 + $0xc0] sm:$0xff]  }
  0xeb   :  { %v2508_v1 = vpop.f32.mrf.mxu0  ;;  %v2535_v4 = vadd.f32 %v2534_v0, %v2533_v60  ;;  %v2866_v60 = vld [vmem:[%s3642_s3 + $0x118] sm:$0xff]   ;;  %v2869_v0 = vld [vmem:[%s3642_s3 + $0x100] sm:$0xff]  }
  0xec   :  { %v435_v2 = vmax.f32 %v422_v62, 0.0  ;;  %v377_v3 = vadd.f32 %v2507_v63, %v2286_v53  ;;  %v2536_v5 = vpop.f32.mrf.mxu1  ;;  %v2867_v62 = vld [vmem:[%s3642_s3 + $0x110] sm:$0xff]   ;;  %v2868_v63 = vld [vmem:[%s3642_s3 + $0x108] sm:$0xff]  }
  0xed   :  { %v2509_v6 = vpop.f32.mrf.mxu0 }
  0xee   :  { %v2483_v7 = vpack.c.bf16 %v435_v2, %v435_v2  ;;  %v425_v8 = vadd.f32 %v2535_v4, %v377_v3  ;;  %v2510_v9 = vadd.f32 %v2509_v6, %v2508_v1  ;;  %v2537_v10 = vpop.f32.mrf.mxu1  ;;  %v1208_v2 = vld [vmem:[%s3644_s5 + $0xc0] sm:$0xff]  ;;  %v1209_v4 = vld [vmem:[%s3644_s5 + $0xc8] sm:$0xff] }
  0xef   :  { %v2511_v11 = vpop.f32.mrf.mxu0  ;;  %v2538_v12 = vadd.f32 %v2537_v10, %v2536_v5  ;;  %v1212_v3 = vld [vmem:[%s3644_s5 + $0xe0] sm:$0xff] }
  0xf0   :  { %452 = vst.msk [vmem:[#allocation2] sm:$0xf] %vm451_vm1, %v2483_v7  ;;  %v436_v13 = vmax.f32 %v425_v8, 0.0  ;;  %v382_v14 = vadd.f32 %v2510_v9, %v2286_v53  ;;  %v2539_v15 = vpop.f32.mrf.mxu1  ;;  %v2860_v53 = vld [vmem:[%s3642_s3 + $0xe8] sm:$0xff]   ;;  %v2407_v5 = vcombine.high %v1208_v2, %v1212_v3  ;;  %v2406_v6 = vcombine.low %v1208_v2, %v1212_v3  ;;  %v1200_v9 = vld [vmem:[%s3644_s5 + $0x80] sm:$0xff] }
  0xf1   :  { %v2512_v16 = vpop.f32.mrf.mxu0  ;;  %v1204_v10 = vld [vmem:[%s3644_s5 + $0xa0] sm:$0xff]  ;;  %v1201_v11 = vld [vmem:[%s3644_s5 + $0x88] sm:$0xff] }
  0xf2   :  { %v2484_v17 = vpack.c.bf16 %v436_v13, %v436_v13  ;;  %v430_v18 = vadd.f32 %v2538_v12, %v382_v14  ;;  %v2540_v19 = vpop.f32.mrf.mxu1  ;;  %v2399_v12 = vcombine.high %v1200_v9, %v1204_v10  ;;  %v1205_v13 = vld [vmem:[%s3644_s5 + $0xa8] sm:$0xff]  ;;  %v2398_v14 = vcombine.low %v1200_v9, %v1204_v10 }
  0xf3   :  { %v2400_v15 = vcombine.low %v1201_v11, %v1205_v13  ;;  %v2401_v16 = vcombine.high %v1201_v11, %v1205_v13  ;;  %v1193_v19 = vld [vmem:[%s3644_s5 + $0x48] sm:$0xff] }
  0xf4   :  { %453 = vst.msk [vmem:[#allocation2 + $0x4] sm:$0xf] %vm451_vm1, %v2484_v17  ;;  %v437_v20 = vmax.f32 %v430_v18, 0.0  ;;  %v1192_v17 = vld [vmem:[%s3644_s5 + $0x40] sm:$0xff] }
  0xf5   :  { %v1196_v18 = vld [vmem:[%s3644_s5 + $0x60] sm:$0xff] }
  0xf6   :  { %v2485_v22 = vpack.c.bf16 %v437_v20, %v437_v20  ;;  %v2391_v20 = vcombine.high %v1192_v17, %v1196_v18 }
  0xf7   :  { %v456_v23 = vld [vmem:[#allocation2] sm:$0x1] }
  0xf8   :  { %2696 = vmatmul.mubr.msk.bf16.vlgmr.msra.gmra.mxu1 %vm502_vm2, %v456_v23  ;;  %v2837_v24 = vld [vmem:[#allocation2] ss:$0 sps:$4 sm:$0x22]   ;;  %455 = vst.msk [vmem:[#allocation2 + $0x8] sm:$0x1] %vm454_vm3, %v2485_v22  ;;  %v2390_v22 = vcombine.low %v1192_v17, %v1196_v18 }
  0xf9   :  { %2712 = vmatpush3.bf16.msra.mxu1 %v2836_v21  ;;  %2719 = vmatprep.mubr.msk.bf16.mxu1 %vm2935_vm0, %v2934_v43  ;;  %v477_v27 = vrot.slane %v2837_v24, 1  ;;  %v2844_v32 = vld [vmem:[#allocation2] ss:$0 sps:$4 sm:$0x88]   ;;  %v1197_v21 = vld [vmem:[%s3644_s5 + $0x68] sm:$0xff] }
  0xfa   :  { %2713 = vmatprep.subr.bf16.mxu1 %v2934_v43  ;;  %v706_v35 = vrot.slane %v2844_v32, 3  ;;  %v2847_v36 = vld [vmem:[#allocation2] ss:$0 sps:$4 sm:$0x44]   ;;  %v2392_v23 = vcombine.low %v1193_v19, %v1197_v21  ;;  %v2393_v24 = vcombine.high %v1193_v19, %v1197_v21  ;;  %v3339_v32 = vld [vmem:[%s3644_s5 + $0xf0] sm:$0xff] }
  0xfb   :  { %2684 = vmatmul.mubr.msk.bf16.vlgmr.msra.gmra.mxu0 %vm502_vm2, %v477_v27  ;;  %v625_v39 = vrot.slane %v2847_v36, 2  ;;  %v2854_v45 = vld [vmem:[#allocation2 + $0x4] ss:$0 sps:$4 sm:$0x22]   ;;  %v1185_v27 = vld [vmem:[%s3644_s5 + $0x8] sm:$0xff] }
  0xfc   :  { %2700 = vmatpush3.bf16.msra.mxu0 %v2838_v25  ;;  %2707 = vmatprep.mubr.msk.bf16.mxu0 %vm2935_vm0, %v2934_v43  ;;  %v864_v48 = vrot.slane %v2854_v45, 1  ;;  %v775_v51 = vld [vmem:[#allocation2 + $0x4] sm:$0x1]  ;;  %v2381_v18 = vld [vmem:[%s3646_s4] ss:$0 sm:$0xff] }
  0xfd   :  { %2714 = vmatpush3.bf16.msra.mxu1 %v2839_v26  ;;  %2701 = vmatprep.subr.bf16.mxu0 %v2934_v43  ;;  %v2863_v56 = vld [vmem:[#allocation2 + $0x4] ss:$0 sps:$4 sm:$0x88]  }
  0xfe   :  { %2715 = vmatprep.subr.bf16.mxu1 %v2934_v43  ;;  %v1026_v58 = vrot.slane %v2863_v56, 3  ;;  %v2865_v59 = vld [vmem:[#allocation2 + $0x4] ss:$0 sps:$4 sm:$0x44]  }
  0xff   :  { %v945_v61 = vrot.slane %v2865_v59, 2  ;;  %v1095_v1 = vld [vmem:[#allocation2 + $0x8] sm:$0x1]  ;;  %v1184_v25 = vld [vmem:[%s3644_s5] sm:$0xff] }
 0x100   :  { %2702 = vmatpush3.bf16.msra.mxu0 %v2840_v28  ;;  %v1188_v26 = vld [vmem:[%s3644_s5 + $0x20] sm:$0xff] }
 0x101   :  { %2716 = vmatpush3.bf16.msra.mxu1 %v2841_v29  ;;  %2703 = vmatprep.subr.bf16.mxu0 %v2934_v43  ;;  %v2382_v28 = vcombine.low %v1184_v25, %v1188_v26  ;;  %v2383_v29 = vcombine.high %v1184_v25, %v1188_v26  ;;  %v1202_v26 = vld [vmem:[%s3644_s5 + $0x90] sm:$0xff] }
 0x102   :  { %2717 = vmatprep.subr.bf16.mxu1 %v2934_v43 }
 0x104   :  { %2704 = vmatpush3.bf16.msra.mxu0 %v2842_v30  ;;  %v1189_v30 = vld [vmem:[%s3644_s5 + $0x28] sm:$0xff] }
 0x105   :  { %2718 = vmatpush3.bf16.msra.mxu1 %v2843_v31  ;;  %2705 = vmatprep.subr.bf16.mxu0 %v2934_v43  ;;  %v3334_v31 = vld [vmem:[%s3644_s5 + $0xd0] sm:$0xff] }
 0x106   :  { %2735 = vmatprep.subr.bf16.mxu1 %v2934_v43  ;;  %v2410_v36 = vcombine.low %v3334_v31, %v3339_v32 }
 0x108   :  { %2720 = vmatmul.mubr.msk.bf16.vlgmr.msra.gmra.mxu1 %vm502_vm2, %v706_v35  ;;  %2706 = vmatpush3.bf16.msra.mxu0 %v2845_v33  ;;  %v2384_v33 = vcombine.low %v1185_v27, %v1189_v30  ;;  %v2936_v35 = vmov 0  }
 0x109   :  { %2736 = vmatpush3.bf16.msra.mxu1 %v2846_v34  ;;  %2723 = vmatprep.subr.bf16.mxu0 %v2934_v43  ;;  %v2385_v34 = vcombine.high %v1185_v27, %v1189_v30  ;;  %v1206_v27 = vld [vmem:[%s3644_s5 + $0xb0] sm:$0xff] }
 0x10a   :  { %2737 = vmatprep.subr.bf16.mxu1 %v2934_v43  ;;  %2743 = vmatprep.mubr.msk.bf16.mxu1 %vm2935_vm0, %v2934_v43  ;;  %v2403_v30 = vcombine.high %v1202_v26, %v1206_v27 }
 0x10b   :  { %2708 = vmatmul.mubr.msk.bf16.vlgmr.msra.gmra.mxu0 %vm502_vm2, %v625_v39  ;;  %v2411_v39 = vcombine.high %v3334_v31, %v3339_v32  ;;  %v1187_v31 = vld [vmem:[%s3644_s5 + $0x18] sm:$0xff] }
 0x10c   :  { %2724 = vmatpush3.bf16.msra.mxu0 %v2848_v37  ;;  %2731 = vmatprep.mubr.msk.bf16.mxu0 %vm2935_vm0, %v2934_v43  ;;  %v3347_v37 = vld [vmem:[%s3644_s5 + $0xd8] sm:$0xff] }
 0x10d   :  { %2738 = vmatpush3.bf16.msra.mxu1 %v2849_v38  ;;  %2725 = vmatprep.subr.bf16.mxu0 %v2934_v43  ;;  %v3352_v38 = vld [vmem:[%s3644_s5 + $0xf8] sm:$0xff] }
 0x10e   :  { %2739 = vmatprep.subr.bf16.mxu1 %v2934_v43  ;;  %v1191_v32 = vld [vmem:[%s3644_s5 + $0x38] sm:$0xff] }
 0x110   :  { %2726 = vmatpush3.bf16.msra.mxu0 %v2850_v40  ;;  %v2412_v40 = vcombine.low %v3347_v37, %v3352_v38 }
 0x111   :  { %2740 = vmatpush3.bf16.msra.mxu1 %v2851_v41  ;;  %2727 = vmatprep.subr.bf16.mxu0 %v2934_v43  ;;  %v2413_v41 = vcombine.high %v3347_v37, %v3352_v38 }
 0x112   :  { %2741 = vmatprep.subr.bf16.mxu1 %v2934_v43 }
 0x114   :  { %2728 = vmatpush3.bf16.msra.mxu0 %v2852_v42 }
 0x115   :  { %2742 = vmatpush3.bf16.msra.mxu1 %v2853_v44  ;;  %2729 = vmatprep.subr.bf16.mxu0 %v2934_v43 }
 0x116   :  { %2759 = vmatprep.subr.bf16.mxu1 %v2934_v43 }
 0x118   :  { %2744 = vmatmul.mubr.msk.bf16.vlgmr.msra.gmra.mxu1 %vm502_vm2, %v864_v48  ;;  %2730 = vmatpush3.bf16.msra.mxu0 %v2855_v46 }
 0x119   :  { %2760 = vmatpush3.bf16.msra.mxu1 %v2856_v47  ;;  %2747 = vmatprep.subr.bf16.mxu0 %v2934_v43 }
 0x11a   :  { %2761 = vmatprep.subr.bf16.mxu1 %v2934_v43  ;;  %2767 = vmatprep.mubr.msk.bf16.mxu1 %vm2935_vm0, %v2934_v43 }
 0x11b   :  { %2732 = vmatmul.mubr.msk.bf16.vlgmr.msra.gmra.mxu0 %vm502_vm2, %v775_v51 }
 0x11c   :  { %2748 = vmatpush3.bf16.msra.mxu0 %v2857_v49  ;;  %2755 = vmatprep.mubr.msk.bf16.mxu0 %vm2935_vm0, %v2934_v43 }
 0x11d   :  { %2762 = vmatpush3.bf16.msra.mxu1 %v2858_v50  ;;  %2749 = vmatprep.subr.bf16.mxu0 %v2934_v43 }
 0x11e   :  { %2763 = vmatprep.subr.bf16.mxu1 %v2934_v43 }
 0x120   :  { %2750 = vmatpush3.bf16.msra.mxu0 %v2859_v52 }
 0x121   :  { %2764 = vmatpush3.bf16.msra.mxu1 %v2860_v53  ;;  %2751 = vmatprep.subr.bf16.mxu0 %v2934_v43 }
 0x122   :  { %2765 = vmatprep.subr.bf16.mxu1 %v2934_v43 }
 0x124   :  { %2752 = vmatpush3.bf16.msra.mxu0 %v2861_v54 }
 0x125   :  { %2766 = vmatpush3.bf16.msra.mxu1 %v2862_v55  ;;  %2753 = vmatprep.subr.bf16.mxu0 %v2934_v43 }
 0x126   :  { %1429 = vmatprep.subr.bf16.mxu1 %v2407_v5 }
 0x128   :  { %2768 = vmatmul.mubr.msk.bf16.vlgmr.msra.gmra.mxu1 %vm502_vm2, %v1026_v58  ;;  %2754 = vmatpush3.bf16.msra.mxu0 %v2864_v57 }
 0x129   :  { %2771 = vmatprep.subr.bf16.mxu0 %v2934_v43  ;;  %1430 = vmatpush1.bf16.msra.mxu1 %v2406_v6 }
 0x12a   :  { %1431 = vmatprep.subr.bf16.mxu1 %v2399_v12  ;;  %1453 = vmatprep.mubr.bf16.mxu1 %v2936_v35 }
 0x12b   :  { %2756 = vmatmul.mubr.msk.bf16.vlgmr.msra.gmra.mxu0 %vm502_vm2, %v945_v61 }
 0x12c   :  { %2772 = vmatpush3.bf16.msra.mxu0 %v2866_v60  ;;  %2779 = vmatprep.mubr.msk.bf16.mxu0 %vm2935_vm0, %v2934_v43 }
 0x12d   :  { %2773 = vmatprep.subr.bf16.mxu0 %v2934_v43  ;;  %1432 = vmatpush1.bf16.msra.mxu1 %v2398_v14 }
 0x12e   :  { %1433 = vmatprep.subr.bf16.mxu1 %v2391_v20 }
 0x130   :  { %2774 = vmatpush3.bf16.msra.mxu0 %v2867_v62 }
 0x131   :  { %2775 = vmatprep.subr.bf16.mxu0 %v2934_v43  ;;  %1434 = vmatpush1.bf16.msra.mxu1 %v2390_v22 }
 0x132   :  { %1435 = vmatprep.subr.bf16.mxu1 %v2383_v29  ;;  %v1207_v29 = vld [vmem:[%s3644_s5 + $0xb8] sm:$0xff] }
 0x134   :  { %2776 = vmatpush3.bf16.msra.mxu0 %v2868_v63 }
 0x135   :  { %2777 = vmatprep.subr.bf16.mxu0 %v2934_v43  ;;  %v1213_v43 = vld [vmem:[%s3644_s5 + $0xe8] sm:$0xff]  ;;  %1436 = vmatpush1.bf16.msra.mxu1 %v2382_v28  ;;  %v1203_v28 = vld [vmem:[%s3644_s5 + $0x98] sm:$0xff] }
 0x136   :  { %v2408_v7 = vcombine.low %v1209_v4, %v1213_v43  ;;  %v2409_v8 = vcombine.high %v1209_v4, %v1213_v43  ;;  %1511 = vmatprep.subr.bf16.mxu1 %v2411_v39  ;;  %v1198_v39 = vld [vmem:[%s3644_s5 + $0x70] sm:$0xff] }
 0x138   :  { %2778 = vmatpush3.bf16.msra.mxu0 %v2869_v0 }
 0x139   :  { %1470 = vmatprep.subr.bf16.mxu0 %v2409_v8 }
 0x13b   :  { %2780 = vmatmul.mubr.msk.bf16.vlgmr.msra.gmra.mxu0 %vm502_vm2, %v1095_v1 }
 0x13c   :  { %1471 = vmatpush1.bf16.msra.mxu0 %v2408_v7  ;;  %1494 = vmatprep.mubr.bf16.mxu0 %v2936_v35 }
 0x13d   :  { %1472 = vmatprep.subr.bf16.mxu0 %v2401_v16 }
 0x140   :  { %1473 = vmatpush1.bf16.msra.mxu0 %v2400_v15 }
 0x141   :  { %1474 = vmatprep.subr.bf16.mxu0 %v2393_v24 }
 0x144   :  { %1475 = vmatpush1.bf16.msra.mxu0 %v2392_v23 }
 0x145   :  { %1476 = vmatprep.subr.bf16.mxu0 %v2385_v34  ;;  %v1194_v34 = vld [vmem:[%s3644_s5 + $0x50] sm:$0xff] }
 0x148   :  { %1477 = vmatpush1.bf16.msra.mxu0 %v2384_v33  ;;  %v2405_v33 = vcombine.high %v1203_v28, %v1207_v29 }
 0x149   :  { %1552 = vmatprep.subr.bf16.mxu0 %v2413_v41 }
 0x1b8   :  { %v607_v42 = vpop.f32.mrf.mxu1 }
 0x1ba   :  { %v2697_v44 = vpop.f32.mrf.mxu1 }
 0x1bb   :  { %v540_v45 = vpop.f32.mrf.mxu0  ;;  %v1199_v44 = vld [vmem:[%s3644_s5 + $0x78] sm:$0xff] }
 0x1bc   :  { %v610_v46 = vpop.f32.mrf.mxu1  ;;  %v608_v4 = vadd.f32 %v607_v42, %v540_v45  ;;  %v1195_v42 = vld [vmem:[%s3644_s5 + $0x58] sm:$0xff]  ;;  %v2402_v45 = vcombine.low %v1202_v26, %v1206_v27 }
 0x1bd   :  { %v2685_v47 = vpop.f32.mrf.mxu0  ;;  %v2404_v46 = vcombine.low %v1203_v28, %v1207_v29  ;;  %v2396_v37 = vcombine.low %v1195_v42, %v1199_v44 }
 0x1be   :  { %v2698_v48 = vpop.f32.mrf.mxu1  ;;  %v2395_v47 = vcombine.high %v1194_v34, %v1198_v39 }
 0x1bf   :  { %v543_v49 = vpop.f32.mrf.mxu0  ;;  %v2397_v48 = vcombine.high %v1195_v42, %v1199_v44 }
 0x1c0   :  { %v1186_v49 = vld [vmem:[%s3644_s5 + $0x10] sm:$0xff] }
 0x1c1   :  { %v2686_v50 = vpop.f32.mrf.mxu0 }
 0x1c2   :  { %v1190_v50 = vld [vmem:[%s3644_s5 + $0x30] sm:$0xff] }
 0x1c3   :  { %v2387_v38 = vcombine.high %v1186_v49, %v1190_v50 }
 0x1c8   :  { %v768_v51 = vpop.f32.mrf.mxu1 }
 0x1ca   :  { %v2721_v52 = vpop.f32.mrf.mxu1 }
 0x1cb   :  { %v687_v53 = vpop.f32.mrf.mxu0  ;;  %v2388_v52 = vcombine.low %v1187_v31, %v1191_v32 }
 0x1cc   :  { %v771_v54 = vpop.f32.mrf.mxu1  ;;  %v693_v43 = vadd.f32 %v687_v53, %v608_v4  ;;  %v2870_v53 = vld [vmem:[%s3645_s8 + $0x78] sm:$0xff]  }
 0x1cd   :  { %v2709_v55 = vpop.f32.mrf.mxu0  ;;  %v2872_v54 = vld [vmem:[%s3645_s8 + $0x38] sm:$0xff]  }
 0x1ce   :  { %v2722_v56 = vpop.f32.mrf.mxu1  ;;  %v774_v10 = vadd.f32 %v768_v51, %v693_v43  ;;  %v2386_v51 = vcombine.low %v1186_v49, %v1190_v50  ;;  %v2873_v55 = vld [vmem:[%s3645_s8 + $0xb8] sm:$0xff]  }
 0x1cf   :  { %v690_v57 = vpop.f32.mrf.mxu0  ;;  %v2874_v56 = vld [vmem:[%s3645_s8 + $0x70] sm:$0xff]   ;;  %v2886_v4 = vld [vmem:[%s3645_s8 + $0x58] sm:$0xff]  }
 0x1d0   :  { %v2875_v57 = vld [vmem:[%s3645_s8 + $0xf0] sm:$0xff]   ;;  %v2888_v43 = vld [vmem:[%s3645_s8 + $0x18] sm:$0xff]  }
 0x1d1   :  { %v2710_v58 = vpop.f32.mrf.mxu0 }
 0x1d2   :  { %v2876_v58 = vld [vmem:[%s3645_s8 + $0x30] sm:$0xff]  }
 0x1d8   :  { %v926_v59 = vpop.f32.mrf.mxu1 }
 0x1da   :  { %v2745_v60 = vpop.f32.mrf.mxu1 }
 0x1db   :  { %v845_v61 = vpop.f32.mrf.mxu0  ;;  %v2878_v60 = vld [vmem:[%s3645_s8 + $0x68] sm:$0xff]  }
 0x1dc   :  { %v929_v62 = vpop.f32.mrf.mxu1  ;;  %v851_v12 = vadd.f32 %v845_v61, %v774_v10  ;;  %v2879_v61 = vld [vmem:[%s3645_s8 + $0xe8] sm:$0xff]   ;;  %v2893_v10 = vld [vmem:[%s3645_s8 + $0x90] sm:$0xff]  }
 0x1dd   :  { %v2733_v63 = vpop.f32.mrf.mxu0  ;;  %v2880_v62 = vld [vmem:[%s3645_s8 + $0x28] sm:$0xff]  }
 0x1de   :  { %v2746_v0 = vpop.f32.mrf.mxu1  ;;  %v932_v14 = vadd.f32 %v926_v59, %v851_v12  ;;  %v2877_v59 = vld [vmem:[%s3645_s8 + $0xb0] sm:$0xff]   ;;  %v2881_v63 = vld [vmem:[%s3645_s8 + $0xa8] sm:$0xff]  }
 0x1df   :  { %v848_v1 = vpop.f32.mrf.mxu0  ;;  %v2882_v0 = vld [vmem:[%s3645_s8 + $0x60] sm:$0xff]   ;;  %v2895_v12 = vld [vmem:[%s3645_s8 + $0xc8] sm:$0xff]  }
 0x1e0   :  { %v2883_v1 = vld [vmem:[%s3645_s8 + $0xe0] sm:$0xff]  }
 0x1e1   :  { %v2734_v2 = vpop.f32.mrf.mxu0 }
 0x1e2   :  { %v2884_v2 = vld [vmem:[%s3645_s8 + $0x20] sm:$0xff]  }
 0x1e8   :  { %v1088_v3 = vpop.f32.mrf.mxu1 }
 0x1ea   :  { %v2769_v5 = vpop.f32.mrf.mxu1 }
 0x1eb   :  { %v1007_v6 = vpop.f32.mrf.mxu0  ;;  %v2887_v5 = vld [vmem:[%s3645_s8 + $0xd8] sm:$0xff]  }
 0x1ec   :  { %v1091_v7 = vpop.f32.mrf.mxu1  ;;  %v1013_v15 = vadd.f32 %v1007_v6, %v932_v14  ;;  %v2889_v6 = vld [vmem:[%s3645_s8 + $0x98] sm:$0xff]   ;;  %v2897_v14 = vld [vmem:[%s3645_s8 + $0x88] sm:$0xff]  }
 0x1ed   :  { %v2757_v8 = vpop.f32.mrf.mxu0  ;;  %v2890_v7 = vld [vmem:[%s3645_s8 + $0x50] sm:$0xff]  }
 0x1ee   :  { %v2770_v9 = vpop.f32.mrf.mxu1  ;;  %v1094_v16 = vadd.f32 %v1088_v3, %v1013_v15  ;;  %v2885_v3 = vld [vmem:[%s3645_s8 + $0xa0] sm:$0xff]   ;;  %v2891_v8 = vld [vmem:[%s3645_s8 + $0xd0] sm:$0xff]  }
 0x1ef   :  { %v1010_v11 = vpop.f32.mrf.mxu0  ;;  %v2892_v9 = vld [vmem:[%s3645_s8 + $0x10] sm:$0xff]   ;;  %v2898_v15 = vld [vmem:[%s3645_s8 + $0x40] sm:$0xff]  }
 0x1f0   :  { %v2894_v11 = vld [vmem:[%s3645_s8 + $0x48] sm:$0xff]  }
 0x1f1   :  { %v2758_v13 = vpop.f32.mrf.mxu0 }
 0x1f2   :  { %v2896_v13 = vld [vmem:[%s3645_s8 + $0x8] sm:$0xff]  }
 0x1fb   :  { %v1165_v17 = vpop.f32.mrf.mxu0 }
 0x1fc   :  { %v1171_v19 = vadd.f32 %v1165_v17, %v1094_v16  ;;  %v2899_v16 = vld [vmem:[%s3645_s8 + $0xc0] sm:$0xff]  }
 0x1fd   :  { %v2781_v20 = vpop.f32.mrf.mxu0  ;;  %v2900_v17 = vld [vmem:[%s3645_s8] sm:$0xff]  }
 0x1fe   :  { %v1179_v21 = vadd.f32 %v2381_v18, %v1171_v19  ;;  %v2901_v18 = vld [vmem:[%s3645_s8 + $0x80] sm:$0xff]   ;;  %v2902_v19 = vld [vmem:[%s3647_s7 + $0x78] sm:$0xff]  }
 0x1ff   :  { %v1168_v22 = vpop.f32.mrf.mxu0  ;;  %v2903_v20 = vld [vmem:[%s3647_s7 + $0xf8] sm:$0xff]  }
 0x200   :  { %v1180_v23 = vmax.f32 %v1179_v21, 0.0 }
 0x201   :  { %v2782_v24 = vpop.f32.mrf.mxu0 }
 0x202   :  { %v1181_v25 = vpack.c.bf16 %v1180_v23, %v1180_v23 }
 0x204   :  { %1182 = vst.msk [vmem:[#allocation3] sm:$0x1] %vm454_vm3, %v1181_v25  ;;  %v1218_v25 = vlaneseq }
 0x20b   :  { %v1183_v41 = vld [vmem:[#allocation3] sm:$0x1] }
 0x20c   :  { %2414 = vmatmul.mubr.msk.bf16.vlgmr.msra.gmra.mxu1 %vm502_vm2, %v1183_v41  ;;  %2415 = vmatmul.mubr.msk.bf16.vlgmr.msra.gmra.mxu0 %vm502_vm2, %v1183_v41 }
 0x20d   :  { %1512 = vmatpush1.bf16.msra.mxu1 %v2410_v36  ;;  %1553 = vmatpush1.bf16.msra.mxu0 %v2412_v40  ;;  %v2394_v36 = vcombine.low %v1194_v34, %v1198_v39  ;;  %v2389_v40 = vcombine.high %v1187_v31, %v1191_v32 }
 0x20e   :  { %1513 = vmatprep.subr.bf16.mxu1 %v2403_v30  ;;  %1554 = vmatprep.subr.bf16.mxu0 %v2405_v33  ;;  %v3519_v30 = vshrl.u32 %v1218_v25, 7  ;;  %v2921_v25 = vld [vmem:[%s3647_s7 + $0x98] sm:$0xff]  }
 0x20f   :  { %1535 = vmatprep.mubr.bf16.mxu1 %v2936_v35  ;;  %1576 = vmatprep.mubr.bf16.mxu0 %v2936_v35  ;;  %v2871_v35 = vld [vmem:[%s3645_s8 + $0xf8] sm:$0xff]  }
 0x210   :  { %v1236_v33 = vsub.s32 4, %v3519_v30  ;;  %v1244_v34 = vsub.s32 6, %v3519_v30  ;;  %v1224_v39 = vsub.s32 1, %v3519_v30  ;;  %v1240_v42 = vsub.s32 5, %v3519_v30 }
 0x211   :  { %1514 = vmatpush1.bf16.msra.mxu1 %v2402_v45  ;;  %1555 = vmatpush1.bf16.msra.mxu0 %v2404_v46  ;;  %v1248_v44 = vsub.s32 7, %v3519_v30  ;;  %v3530_v45 = vld [vmem:[%s3648_s6] sm:$0xff] }
 0x212   :  { %1515 = vmatprep.subr.bf16.mxu1 %v2395_v47  ;;  %1556 = vmatprep.subr.bf16.mxu0 %v2397_v48  ;;  %v1237_v46 = vrot.slane %v3530_v45, %v1236_v33  ;;  %v1245_v47 = vrot.slane %v3530_v45, %v1244_v34  ;;  %v1225_v48 = vrot.slane %v3530_v45, %v1224_v39  ;;  %v2924_v33 = vld [vmem:[%s3647_s7 + $0x10] sm:$0xff]  }
 0x213   :  { %v1241_v50 = vrot.slane %v3530_v45, %v1240_v42  ;;  %v1249_v31 = vrot.slane %v3530_v45, %v1248_v44  ;;  %v2927_v42 = vld [vmem:[%s3647_s7 + $0xc8] sm:$0xff]  }
 0x214   :  { %v2928_v44 = vld [vmem:[%s3647_s7 + $0x8] sm:$0xff]  }
 0x215   :  { %1516 = vmatpush1.bf16.msra.mxu1 %v2394_v36  ;;  %1557 = vmatpush1.bf16.msra.mxu0 %v2396_v37 }
 0x216   :  { %1517 = vmatprep.subr.bf16.mxu1 %v2387_v38  ;;  %1558 = vmatprep.subr.bf16.mxu0 %v2389_v40 }
 0x219   :  { %1518 = vmatpush1.bf16.msra.mxu1 %v2386_v51  ;;  %1559 = vmatpush1.bf16.msra.mxu0 %v2388_v52 }
 0x21a   :  { %2587 = vmatprep.subr.bf16.mxu1 %v2870_v53  ;;  %2609 = vmatprep.subr.bf16.mxu0 %v2871_v35 }
 0x21c   :  { %2416 = vmatmul.mubr.msk.bf16.vlgmr.msra.gmra.mxu1 %vm502_vm2, %v1183_v41  ;;  %2417 = vmatmul.mubr.msk.bf16.vlgmr.msra.gmra.mxu0 %vm502_vm2, %v1183_v41  ;;  %v1232_v41 = vsub.s32 3, %v3519_v30 }
 0x21d   :  { %2588 = vmatpush3.bf16.msra.mxu1 %v2872_v54  ;;  %2610 = vmatpush3.bf16.msra.mxu0 %v2873_v55 }
 0x21e   :  { %2589 = vmatprep.subr.bf16.mxu1 %v2874_v56  ;;  %2611 = vmatprep.subr.bf16.mxu0 %v2875_v57  ;;  %v1233_v49 = vrot.slane %v3530_v45, %v1232_v41  ;;  %v2926_v41 = vld [vmem:[%s3647_s7 + $0x48] sm:$0xff]  }
 0x221   :  { %2590 = vmatpush3.bf16.msra.mxu1 %v2876_v58  ;;  %2612 = vmatpush3.bf16.msra.mxu0 %v2877_v59 }
 0x222   :  { %2591 = vmatprep.subr.bf16.mxu1 %v2878_v60  ;;  %2613 = vmatprep.subr.bf16.mxu0 %v2879_v61 }
 0x225   :  { %2592 = vmatpush3.bf16.msra.mxu1 %v2880_v62  ;;  %2614 = vmatpush3.bf16.msra.mxu0 %v2881_v63 }
 0x226   :  { %2593 = vmatprep.subr.bf16.mxu1 %v2882_v0  ;;  %2615 = vmatprep.subr.bf16.mxu0 %v2883_v1 }
 0x229   :  { %2594 = vmatpush3.bf16.msra.mxu1 %v2884_v2  ;;  %2616 = vmatpush3.bf16.msra.mxu0 %v2885_v3  ;;  %v2904_v3 = vld [vmem:[%s3647_s7 + $0x38] sm:$0xff]  }
 0x22a   :  { %2595 = vmatprep.subr.bf16.mxu1 %v2886_v4  ;;  %2617 = vmatprep.subr.bf16.mxu0 %v2887_v5  ;;  %v2905_v4 = vld [vmem:[%s3647_s7 + $0xb8] sm:$0xff]  }
 0x22d   :  { %2596 = vmatpush3.bf16.msra.mxu1 %v2888_v43  ;;  %2618 = vmatpush3.bf16.msra.mxu0 %v2889_v6  ;;  %v2906_v6 = vld [vmem:[%s3647_s7 + $0x70] sm:$0xff]  }
 0x22e   :  { %2597 = vmatprep.subr.bf16.mxu1 %v2890_v7  ;;  %2619 = vmatprep.subr.bf16.mxu0 %v2891_v8  ;;  %v2907_v7 = vld [vmem:[%s3647_s7 + $0xf0] sm:$0xff]  }
 0x231   :  { %2598 = vmatpush3.bf16.msra.mxu1 %v2892_v9  ;;  %2620 = vmatpush3.bf16.msra.mxu0 %v2893_v10  ;;  %v2908_v10 = vld [vmem:[%s3647_s7 + $0x30] sm:$0xff]  }
 0x232   :  { %2599 = vmatprep.subr.bf16.mxu1 %v2894_v11  ;;  %2621 = vmatprep.subr.bf16.mxu0 %v2895_v12  ;;  %v2909_v11 = vld [vmem:[%s3647_s7 + $0xb0] sm:$0xff]   ;;  %v2910_v12 = vld [vmem:[%s3647_s7 + $0x68] sm:$0xff]  }
 0x235   :  { %2600 = vmatpush3.bf16.msra.mxu1 %v2896_v13  ;;  %2622 = vmatpush3.bf16.msra.mxu0 %v2897_v14  ;;  %v2911_v13 = vld [vmem:[%s3647_s7 + $0xe8] sm:$0xff]  }
 0x236   :  { %2601 = vmatprep.subr.bf16.mxu1 %v2898_v15  ;;  %2623 = vmatprep.subr.bf16.mxu0 %v2899_v16  ;;  %v2912_v14 = vld [vmem:[%s3647_s7 + $0x28] sm:$0xff]   ;;  %v2914_v16 = vld [vmem:[%s3647_s7 + $0x60] sm:$0xff]  }
 0x237   :  { %v2913_v15 = vld [vmem:[%s3647_s7 + $0xa8] sm:$0xff]  }
 0x239   :  { %2602 = vmatpush3.bf16.msra.mxu1 %v2900_v17  ;;  %2624 = vmatpush3.bf16.msra.mxu0 %v2901_v18  ;;  %v2915_v17 = vld [vmem:[%s3647_s7 + $0xe0] sm:$0xff]  }
 0x23a   :  { %2631 = vmatprep.subr.bf16.mxu1 %v2902_v19  ;;  %2653 = vmatprep.subr.bf16.mxu0 %v2903_v20  ;;  %v2916_v18 = vld [vmem:[%s3647_s7 + $0x20] sm:$0xff]   ;;  %v2918_v20 = vld [vmem:[%s3647_s7 + $0x58] sm:$0xff]  }
 0x23b   :  { %v2917_v19 = vld [vmem:[%s3647_s7 + $0xa0] sm:$0xff]  }
 0x2cc   :  { %v3515_v21 = vpop.f32.mrf.mxu1  ;;  %v3517_v22 = vpop.f32.mrf.mxu0 }
 0x2ce   :  { %v1457_v23 = vpop.f32.mrf.mxu1  ;;  %v1498_v24 = vpop.f32.mrf.mxu0 }
 0x2cf   :  { %v1458_v40 = vadd.f32 %v1457_v23, %v1225_v48  ;;  %v1499_v51 = vadd.f32 %v1498_v24, %v1233_v49  ;;  %v2919_v23 = vld [vmem:[%s3647_s7 + $0xd8] sm:$0xff]   ;;  %v2930_v48 = vld [vmem:[%s3647_s7 + $0x40] sm:$0xff]  }
 0x2d0   :  { %v1459_v26 = vpop.f32.mrf.mxu1  ;;  %v1500_v27 = vpop.f32.mrf.mxu0  ;;  %v2920_v24 = vld [vmem:[%s3647_s7 + $0x18] sm:$0xff]   ;;  %v2931_v49 = vld [vmem:[%s3647_s7 + $0xc0] sm:$0xff]  }
 0x2d1   :  { %v1586_v61 = vmax.f32 %v1458_v40, 0.0  ;;  %v1588_v62 = vmax.f32 %v1499_v51, 0.0  ;;  %v1220_v26 = vsub.s32 0, %v3519_v30  ;;  %v1228_v27 = vsub.s32 2, %v3519_v30  ;;  %v2925_v30 = vld [vmem:[%s3647_s7 + $0x90] sm:$0xff]  }
 0x2d2   :  { %v1460_v28 = vpop.f32.mrf.mxu1  ;;  %v1501_v29 = vpop.f32.mrf.mxu0 }
 0x2d3   :  { %v1594_v8 = vpack.c.bf16 %v1586_v61, %v1586_v61  ;;  %v1596_v9 = vpack.c.bf16 %v1588_v62, %v1588_v62  ;;  %v2922_v28 = vld [vmem:[%s3647_s7 + $0x50] sm:$0xff]   ;;  %v1221_v34 = vrot.slane %v3530_v45, %v1220_v26  ;;  %v1229_v39 = vrot.slane %v3530_v45, %v1228_v27  ;;  %v2929_v45 = vld [vmem:[%s3647_s7 + $0x88] sm:$0xff]  }
 0x2d4   :  { %v2923_v29 = vld [vmem:[%s3647_s7 + $0xd0] sm:$0xff]  }
 0x2dc   :  { %v1537_v32 = vpop.f32.mrf.mxu1  ;;  %v1578_v36 = vpop.f32.mrf.mxu0 }
 0x2dd   :  { %v1538_v37 = vadd.f32 %v1537_v32, %v1237_v46  ;;  %v1579_v38 = vadd.f32 %v1578_v36, %v1245_v47  ;;  %v1456_v46 = vadd.f32 %v3515_v21, %v1221_v34  ;;  %v1497_v47 = vadd.f32 %v3517_v22, %v1229_v39  ;;  %v2933_v21 = vld [vmem:[%s3647_s7 + $0x80] sm:$0xff]  }
 0x2de   :  { %v1539_v52 = vpop.f32.mrf.mxu1  ;;  %v1580_v53 = vpop.f32.mrf.mxu0 }
 0x2df   :  { %v1540_v35 = vadd.f32 %v1539_v52, %v1241_v50  ;;  %v1581_v54 = vadd.f32 %v1580_v53, %v1249_v31  ;;  %v1589_v55 = vmax.f32 %v1538_v37, 0.0  ;;  %v1591_v56 = vmax.f32 %v1579_v38, 0.0  ;;  %v2932_v50 = vld [vmem:[%s3647_s7] sm:$0xff]  }
 0x2e0   :  { %v1541_v57 = vpop.f32.mrf.mxu1  ;;  %v1582_v58 = vpop.f32.mrf.mxu0  ;;  %v1585_v22 = vmax.f32 %v1456_v46, 0.0  ;;  %v1587_v31 = vmax.f32 %v1497_v47, 0.0 }
 0x2e1   :  { %v1590_v59 = vmax.f32 %v1540_v35, 0.0  ;;  %v1592_v60 = vmax.f32 %v1581_v54, 0.0  ;;  %v1597_v5 = vpack.c.bf16 %v1589_v55, %v1589_v55  ;;  %v1599_v43 = vpack.c.bf16 %v1591_v56, %v1591_v56 }
 0x2e2   :  { %v1542_v63 = vpop.f32.mrf.mxu1  ;;  %v1583_v0 = vpop.f32.mrf.mxu0  ;;  %v1593_v32 = vpack.c.bf16 %v1585_v22, %v1585_v22  ;;  %v1595_v36 = vpack.c.bf16 %v1587_v31, %v1587_v31 }
 0x2e3   :  { %v1598_v1 = vpack.c.bf16 %v1590_v59, %v1590_v59  ;;  %v1600_v2 = vpack.c.bf16 %v1592_v60, %v1592_v60 }
 0x2e5   :  { %1953 = vmatprep.mubr.bf16.mxu1 %v1598_v1  ;;  %1993 = vmatprep.mubr.bf16.mxu0 %v1600_v2 }
 0x2e6   :  { %1954 = vmatmul.mubr.bf16.vlgmr.msra.gmra.mxu1 %v1597_v5  ;;  %1994 = vmatmul.mubr.bf16.vlgmr.msra.gmra.mxu0 %v1599_v43 }
 0x2e7   :  { %2632 = vmatpush3.bf16.msra.mxu1 %v2904_v3  ;;  %2654 = vmatpush3.bf16.msra.mxu0 %v2905_v4  ;;  %v2482_v3 = vld [vmem:[%s3649_s9] ss:$0 sm:$0xff] }
 0x2e8   :  { %2225 = vmatprep.mubr.bf16.mxu1 %v1594_v8  ;;  %2265 = vmatprep.mubr.bf16.mxu0 %v1596_v9 }
 0x2e9   :  { %2633 = vmatprep.subr.bf16.mxu1 %v2906_v6  ;;  %2655 = vmatprep.subr.bf16.mxu0 %v2907_v7 }
 0x2eb   :  { %2634 = vmatpush3.bf16.msra.mxu1 %v2908_v10  ;;  %2656 = vmatpush3.bf16.msra.mxu0 %v2909_v11 }
 0x2ec   :  { %2635 = vmatprep.subr.bf16.mxu1 %v2910_v12  ;;  %2657 = vmatprep.subr.bf16.mxu0 %v2911_v13 }
 0x2ef   :  { %2636 = vmatpush3.bf16.msra.mxu1 %v2912_v14  ;;  %2658 = vmatpush3.bf16.msra.mxu0 %v2913_v15 }
 0x2f0   :  { %2637 = vmatprep.subr.bf16.mxu1 %v2914_v16  ;;  %2659 = vmatprep.subr.bf16.mxu0 %v2915_v17 }
 0x2f3   :  { %2638 = vmatpush3.bf16.msra.mxu1 %v2916_v18  ;;  %2660 = vmatpush3.bf16.msra.mxu0 %v2917_v19 }
 0x2f4   :  { %2639 = vmatprep.subr.bf16.mxu1 %v2918_v20  ;;  %2661 = vmatprep.subr.bf16.mxu0 %v2919_v23 }
 0x2f7   :  { %2640 = vmatpush3.bf16.msra.mxu1 %v2920_v24  ;;  %2662 = vmatpush3.bf16.msra.mxu0 %v2921_v25 }
 0x2f8   :  { %2641 = vmatprep.subr.bf16.mxu1 %v2922_v28  ;;  %2663 = vmatprep.subr.bf16.mxu0 %v2923_v29 }
 0x2fb   :  { %2642 = vmatpush3.bf16.msra.mxu1 %v2924_v33  ;;  %2664 = vmatpush3.bf16.msra.mxu0 %v2925_v30 }
 0x2fc   :  { %2643 = vmatprep.subr.bf16.mxu1 %v2926_v41  ;;  %2665 = vmatprep.subr.bf16.mxu0 %v2927_v42 }
 0x2ff   :  { %2644 = vmatpush3.bf16.msra.mxu1 %v2928_v44  ;;  %2666 = vmatpush3.bf16.msra.mxu0 %v2929_v45 }
 0x300   :  { %2645 = vmatprep.subr.bf16.mxu1 %v2930_v48  ;;  %2667 = vmatprep.subr.bf16.mxu0 %v2931_v49 }
 0x303   :  { %2646 = vmatpush3.bf16.msra.mxu1 %v2932_v50  ;;  %2668 = vmatpush3.bf16.msra.mxu0 %v2933_v21 }
 0x306   :  { %2226 = vmatmul.mubr.bf16.vlgmr.msra.gmra.mxu1 %v1593_v32  ;;  %2266 = vmatmul.mubr.bf16.vlgmr.msra.gmra.mxu0 %v1595_v36 }
 0x3a6   :  { %v2603_v37 = vpop.f32.mrf.mxu1  ;;  %v2625_v38 = vpop.f32.mrf.mxu0 }
 0x3a8   :  { %v2604_v40 = vpop.f32.mrf.mxu1  ;;  %v2626_v51 = vpop.f32.mrf.mxu0 }
 0x3a9   :  { %v2605_v55 = vadd.f32 %v2604_v40, %v2603_v37  ;;  %v2627_v56 = vadd.f32 %v2626_v51, %v2625_v38 }
 0x3aa   :  { %v2606_v52 = vpop.f32.mrf.mxu1  ;;  %v2628_v53 = vpop.f32.mrf.mxu0 }
 0x3ab   :  { %v1996_v61 = vadd.f32 %v2627_v56, %v2605_v55 }
 0x3ac   :  { %v2607_v35 = vpop.f32.mrf.mxu1  ;;  %v2629_v54 = vpop.f32.mrf.mxu0 }
 0x3c6   :  { %v2647_v57 = vpop.f32.mrf.mxu1  ;;  %v2669_v58 = vpop.f32.mrf.mxu0 }
 0x3c8   :  { %v2648_v59 = vpop.f32.mrf.mxu1  ;;  %v2670_v60 = vpop.f32.mrf.mxu0 }
 0x3c9   :  { %v2649_v62 = vadd.f32 %v2648_v59, %v2647_v57  ;;  %v2671_v2 = vadd.f32 %v2670_v60, %v2669_v58 }
 0x3ca   :  { %v2650_v63 = vpop.f32.mrf.mxu1  ;;  %v2672_v0 = vpop.f32.mrf.mxu0 }
 0x3cb   :  { %v2228_v1 = vadd.f32 %v2649_v62, %v1996_v61 }
 0x3cc   :  { %v2651_v4 = vpop.f32.mrf.mxu1  ;;  %v2673_v5 = vpop.f32.mrf.mxu0 }
 0x3cd   :  { %v2268_v43 = vadd.f32 %v2671_v2, %v2228_v1 }
 0x3cf   :  { %v2280_v6 = vadd.f32 %v2482_v3, %v2268_v43 }
 0x3d1   :  { %2281 = vst [vmem:[%s3650_s10] sm:$0x3] %v2280_v6 }

</bundles_post_ra>
